<compile_context>
chip_gen: v7x
topology: tpu7x:2x2x1
jax: 0.10.0
libtpu: 0.0.40
codegen_flags: <defaults>
</compile_context>

<pallas_src>
import jax
import jax.numpy as jnp
from jax.experimental import pallas as pl
from jax.experimental.pallas import tpu as pltpu


def _round_up(x, m):
    return (x + m - 1) // m * m


def _cdiv(a, b):
    return (a + b - 1) // b


def lstm_block_kernel(x_ref, h_ref, c_ref, wx_ref, wh_ref, b_ref,
                      c_out_ref, h_out_ref):
    """Fused single-step LSTM for one batch tile.

    x_ref  : (TB, FP)    bf16 input features (lane-padded)
    h_ref  : (TB, HP)    bf16 previous hidden state (lane-padded)
    c_ref  : (TB, HP)    f32 previous cell state
    wx_ref : (FP, 4*HP)  bf16 input->gate weights, each gate 128-lane aligned
    wh_ref : (HP, 4*HP)  bf16 hidden->gate weights
    b_ref  : (1, 4*HP)   f32 gate biases
    Gate order: [forget, input_sig, input_tanh, output].
    """
    HP = c_ref.shape[-1]
    x = x_ref[...]
    h = h_ref[...]

    def gate(g):
        # Static, 128-lane-aligned slice of the resident weights.  Two MXU
        # matmuls (bf16 operands, f32 accumulation) for this gate only, so the
        # full (TB, 4*HP) pre-activation never exists; EUP sigmoid/tanh of
        # gate g overlaps the MXU pass of gate g+1.
        # TODO(synk): when FP + HP <= ~512 on v6e/v7x, a fused-K matmul over a
        # VMEM-built [x | h] would halve MXU passes.
        sl = slice(g * HP, (g + 1) * HP)
        return (jnp.dot(x, wx_ref[:, sl], preferred_element_type=jnp.float32)
                + jnp.dot(h, wh_ref[:, sl], preferred_element_type=jnp.float32)
                + b_ref[:, sl])

    c_new = jax.nn.sigmoid(gate(0)) * c_ref[...].astype(jnp.float32)   # forget
    c_new = c_new + jax.nn.sigmoid(gate(1)) * jnp.tanh(gate(2))        # input
    h_new = jnp.tanh(c_new) * jax.nn.sigmoid(gate(3))                  # output

    # Lane-dense (128-multiple) unmasked stores.
    c_out_ref[...] = c_new.astype(c_out_ref.dtype)
    h_out_ref[...] = h_new.astype(h_out_ref.dtype)


def pack_lstm_weights(w_x, w_h, b, *, compute_dtype=jnp.bfloat16):
    """One-time weight re-layout.  Call once at init, NOT per step.

    w_x : (F_in, 4*H)  input->gate weights  (gate order [f, i_sig, i_tanh, o])
    w_h : (H,    4*H)  hidden->gate weights
    b   : (4*H,)       gate biases
    Each gate's output columns are padded to their own 128-lane group and cast
    to `compute_dtype` (bf16 for the MXU); K dims are padded to 128.  The bias
    stays f32 (added to the f32 accumulator).
    """
    F_in = w_x.shape[0]
    H = w_h.shape[0]
    FP = _round_up(F_in, 128)
    HP = _round_up(H, 128)

    def pad_gates(w, rows, rows_p):
        w4 = w.astype(compute_dtype).reshape(rows, 4, H)
        out = jnp.zeros((rows_p, 4, HP), compute_dtype).at[:rows, :, :H].set(w4)
        return out.reshape(rows_p, 4 * HP)

    wx_p = pad_gates(w_x, F_in, FP)
    wh_p = pad_gates(w_h, H, HP)
    b_p = (jnp.zeros((1, 4, HP), jnp.float32)
           .at[0, :, :H].set(b.astype(jnp.float32).reshape(4, H))
           .reshape(1, 4 * HP))
    return wx_p, wh_p, b_p


def lstm_block(x, c, h, wx_p, wh_p, b_p, *, max_batch_tile=256):
    """LSTMBlock.forward as one fused Pallas kernel.

    x    : (B, F_in)   input
    c, h : (B, H)      previous cell / hidden state (f32)
    wx_p, wh_p, b_p    pre-packed weights from pack_lstm_weights()
    Returns (c_new, h_new), each (B, H), in the state dtype.
    """
    B, F_in = x.shape
    H = c.shape[-1]
    FP, W4 = wx_p.shape
    HP = wh_p.shape[0]
    assert W4 == 4 * HP and wh_p.shape[1] == 4 * HP and b_p.shape == (1, 4 * HP)
    assert FP >= F_in and HP >= H

    compute_dtype = wx_p.dtype          # bf16 MXU operands
    state_dtype = c.dtype               # f32 state / outputs

    # Adaptive batch tiling: minimal 8-aligned padding, no round_up(BP, TB)
    # blow-up, >= 2 tiles whenever the batch allows it (pipelining / megacore).
    BP = _round_up(B, 8)
    n_tiles = _cdiv(BP, min(_round_up(max_batch_tile, 8), BP))
    TB = _round_up(_cdiv(BP, n_tiles), 8)
    BP = n_tiles * TB
    grid = (n_tiles,)

    # Activation prep — pure pass-through when already padded / right dtype.
    def prep(a, cols, cols_p, dt):
        if a.shape == (BP, cols_p) and a.dtype == dt:
            return a
        return jnp.zeros((BP, cols_p), dt).at[:B, :cols].set(a.astype(dt))

    x_p = prep(x, F_in, FP, compute_dtype)
    h_p = prep(h, H, HP, compute_dtype)
    c_p = prep(c, H, HP, state_dtype)

    cd = jnp.dtype(compute_dtype).itemsize
    sd = jnp.dtype(state_dtype).itemsize

    # Explicit VMEM budget (conservative: assumes double-buffered weights).
    vmem_needed = (2 * (wx_p.size + wh_p.size) * cd + 2 * b_p.size * 4
                   + 2 * TB * (FP + HP) * cd        # x, h tiles (double-buffered)
                   + 2 * TB * HP * sd               # c tile
                   + 2 * 2 * TB * HP * sd)          # c_out, h_out tiles
    vmem_limit = int(min(max(2 * vmem_needed + (8 << 20), 32 << 20), 128 << 20))

    cost = pl.CostEstimate(
        flops=2 * BP * (FP + HP) * 4 * HP,
        transcendentals=10 * BP * HP,   # 3 sigmoid + 2 tanh, ~exp+recip each
        bytes_accessed=((x_p.size + h_p.size + wx_p.size + wh_p.size) * cd
                        + (c_p.size + 2 * BP * HP) * sd + b_p.size * 4),
    )

    def build(single_buffer_weights):
        wkw = dict(pipeline_mode=pl.Buffered(1)) if single_buffer_weights else {}
        return pl.pallas_call(
            lstm_block_kernel,
            grid=grid,
            in_specs=[
                pl.BlockSpec((TB, FP), lambda i: (i, 0)),             # x tile (pipelined)
                pl.BlockSpec((TB, HP), lambda i: (i, 0)),             # h tile
                pl.BlockSpec((TB, HP), lambda i: (i, 0)),             # c tile
                pl.BlockSpec((FP, 4 * HP), lambda i: (0, 0), **wkw),  # w_x (resident)
                pl.BlockSpec((HP, 4 * HP), lambda i: (0, 0), **wkw),  # w_h (resident)
                pl.BlockSpec((1, 4 * HP), lambda i: (0, 0), **wkw),   # bias (resident)
            ],
            out_specs=(
                pl.BlockSpec((TB, HP), lambda i: (i, 0)),
                pl.BlockSpec((TB, HP), lambda i: (i, 0)),
            ),
            out_shape=(
                jax.ShapeDtypeStruct((BP, HP), state_dtype),
                jax.ShapeDtypeStruct((BP, HP), state_dtype),
            ),
            compiler_params=pltpu.CompilerParams(
                dimension_semantics=("parallel",),
                vmem_limit_bytes=vmem_limit,
            ),
            cost_estimate=cost,
        )

    # TODO(synk): on v7x with tiny B (only 1-2 batch tiles), split the gate/N
    # axis across the grid instead so each TensorCore streams half the weights.
    try:
        c_out, h_out = build(True)(x_p, h_p, c_p, wx_p, wh_p, b_p)
    except Exception:
        # pipeline_mode / Buffered(1) unsupported on this JAX version: fall
        # back to the default (double-buffered) resident weights.
        c_out, h_out = build(False)(x_p, h_p, c_p, wx_p, wh_p, b_p)

    # Strip the padding back off.
    return c_out[:B, :H], h_out[:B, :H]


def lstm_block_ref(x, c, h, w_x, w_h, b):
    """Pure-JAX f32 reference (identical math to the PyTorch module)."""
    H = c.shape[-1]
    z = x @ w_x + h @ w_h + b
    f_gate = jax.nn.sigmoid(z[:, 0 * H:1 * H])
    i_sig = jax.nn.sigmoid(z[:, 1 * H:2 * H])
    i_tanh = jnp.tanh(z[:, 2 * H:3 * H])
    o_gate = jax.nn.sigmoid(z[:, 3 * H:4 * H])
    c_new = f_gate * c + i_sig * i_tanh
    h_new = jnp.tanh(c_new) * o_gate
    return c_new, h_new


if __name__ == "__main__":
    # Small shapes consistent with the module's forward signature.
    B = 2            # batch
    F_IN = 16        # in_features
    H = 32           # hidden_size

    key = jax.random.PRNGKey(0)
    kx, kc, kh, kwx, kwh, kb = jax.random.split(key, 6)

    x = jax.random.normal(kx, (B, F_IN), dtype=jnp.float32)
    c = jax.random.normal(kc, (B, H), dtype=jnp.float32)
    h = jax.random.normal(kh, (B, H), dtype=jnp.float32)

    # nn.Linear-style uniform(-k, k) init, k = 1/sqrt(fan_in), fan_in = F_IN + H.
    # The per-gate Linear over concat(x, h) is split row-wise into the x-part
    # (F_IN rows) and the h-part (H rows); gates stacked along the out dim in
    # the order [forget, input_sig, input_tanh, output].
    fan_in = F_IN + H
    bound = 1.0 / jnp.sqrt(jnp.float32(fan_in))
    w_x = jax.random.uniform(kwx, (F_IN, 4 * H), dtype=jnp.float32,
                             minval=-bound, maxval=bound)
    w_h = jax.random.uniform(kwh, (H, 4 * H), dtype=jnp.float32,
                             minval=-bound, maxval=bound)
    b = jax.random.uniform(kb, (4 * H,), dtype=jnp.float32,
                           minval=-bound, maxval=bound)

    # Pack weights ONCE (padding + bf16 cast happens here, not per step).
    wx_p, wh_p, b_p = pack_lstm_weights(w_x, w_h, b)

    c_new, h_new = lstm_block(x, c, h, wx_p, wh_p, b_p)
    jax.block_until_ready((c_new, h_new))

    c_ref, h_ref = lstm_block_ref(x, c, h, w_x, w_h, b)
    assert c_new.shape == (B, H) and h_new.shape == (B, H)
    # bf16 matmul operands (f32 accumulation): loosened tolerance vs. the f32 ref.
    assert jnp.allclose(c_new, c_ref, atol=5e-2, rtol=5e-2), "c mismatch"
    assert jnp.allclose(h_new, h_ref, atol=5e-2, rtol=5e-2), "h mismatch"

    print("KERNEL_OK")
</pallas_src>

<mosaic_0001>
module attributes {stable_mosaic.version = 11 : i64} {
  func.func @lstm_block_kernel(%arg0: i32, %arg1: memref<8x128xbf16, #tpu.memory_space<vmem>>, %arg2: memref<8x128xbf16, #tpu.memory_space<vmem>>, %arg3: memref<8x128xf32, #tpu.memory_space<vmem>>, %arg4: memref<128x512xbf16, #tpu.memory_space<vmem>>, %arg5: memref<128x512xbf16, #tpu.memory_space<vmem>>, %arg6: memref<1x512xf32, #tpu.memory_space<vmem>>, %arg7: memref<8x128xf32, #tpu.memory_space<vmem>>, %arg8: memref<8x128xf32, #tpu.memory_space<vmem>>) attributes {dimension_semantics = [#tpu.dimension_semantics<parallel>], iteration_bounds = array<i64: 1>, scalar_prefetch = 0 : i64, scratch_operands = 0 : i64, tpu.core_type = #tpu.core_type<tc>, window_params = [{transform_indices = @transform_0, window_bounds = array<i64: 8, 128>}, {transform_indices = @transform_1, window_bounds = array<i64: 8, 128>}, {transform_indices = @transform_2, window_bounds = array<i64: 8, 128>}, {pipeline_mode = #tpu.pipeline_mode<synchronous>, transform_indices = @transform_3, window_bounds = array<i64: 128, 512>}, {pipeline_mode = #tpu.pipeline_mode<synchronous>, transform_indices = @transform_4, window_bounds = array<i64: 128, 512>}, {pipeline_mode = #tpu.pipeline_mode<synchronous>, transform_indices = @transform_5, window_bounds = array<i64: 1, 512>}, {transform_indices = @transform_6, window_bounds = array<i64: 8, 128>}, {transform_indices = @transform_7, window_bounds = array<i64: 8, 128>}]} {
    %c0 = arith.constant 0 : index
    %c0_0 = arith.constant 0 : index
    %0 = vector.load %arg1[%c0, %c0_0] : memref<8x128xbf16, #tpu.memory_space<vmem>>, vector<8x128xbf16>
    %c0_1 = arith.constant 0 : index
    %c0_2 = arith.constant 0 : index
    %1 = vector.load %arg2[%c0_1, %c0_2] : memref<8x128xbf16, #tpu.memory_space<vmem>>, vector<8x128xbf16>
    %c0_3 = arith.constant 0 : index
    %c0_4 = arith.constant 0 : index
    %2 = vector.load %arg4[%c0_3, %c0_4] : memref<128x512xbf16, #tpu.memory_space<vmem>>, vector<128x128xbf16>
    %cst = arith.constant dense<0.000000e+00> : vector<8x128xf32>
    %3 = tpu.matmul %0, %2, %cst {dimension_numbers = #tpu.dot_dimension_numbers<[1], [0], [0], [1], [0, 0, 1, 1], [], []>} : vector<8x128xbf16>, vector<128x128xbf16>, vector<8x128xf32> -> vector<8x128xf32>
    %c0_5 = arith.constant 0 : index
    %c0_6 = arith.constant 0 : index
    %4 = vector.load %arg5[%c0_5, %c0_6] : memref<128x512xbf16, #tpu.memory_space<vmem>>, vector<128x128xbf16>
    %cst_7 = arith.constant dense<0.000000e+00> : vector<8x128xf32>
    %5 = tpu.matmul %1, %4, %cst_7 {dimension_numbers = #tpu.dot_dimension_numbers<[1], [0], [0], [1], [0, 0, 1, 1], [], []>} : vector<8x128xbf16>, vector<128x128xbf16>, vector<8x128xf32> -> vector<8x128xf32>
    %6 = arith.addf %3, %5 : vector<8x128xf32>
    %c0_8 = arith.constant 0 : index
    %c0_9 = arith.constant 0 : index
    %7 = vector.load %arg6[%c0_8, %c0_9] : memref<1x512xf32, #tpu.memory_space<vmem>>, vector<1x128xf32>
    %8 = vector.broadcast %7 : vector<1x128xf32> to vector<8x128xf32>
    %9 = arith.addf %6, %8 : vector<8x128xf32>
    %10 = arith.negf %9 : vector<8x128xf32>
    %11 = math.exp %10 : vector<8x128xf32>
    %cst_10 = arith.constant 1.000000e+00 : f32
    %12 = vector.broadcast %cst_10 : f32 to vector<8x128xf32>
    %13 = arith.addf %12, %11 : vector<8x128xf32>
    %14 = arith.divf %12, %13 : vector<8x128xf32>
    %c0_11 = arith.constant 0 : index
    %c0_12 = arith.constant 0 : index
    %15 = vector.load %arg3[%c0_11, %c0_12] : memref<8x128xf32, #tpu.memory_space<vmem>>, vector<8x128xf32>
    %16 = arith.mulf %14, %15 : vector<8x128xf32>
    %c0_13 = arith.constant 0 : index
    %c128 = arith.constant 128 : index
    %17 = vector.load %arg4[%c0_13, %c128] : memref<128x512xbf16, #tpu.memory_space<vmem>>, vector<128x128xbf16>
    %cst_14 = arith.constant dense<0.000000e+00> : vector<8x128xf32>
    %18 = tpu.matmul %0, %17, %cst_14 {dimension_numbers = #tpu.dot_dimension_numbers<[1], [0], [0], [1], [0, 0, 1, 1], [], []>} : vector<8x128xbf16>, vector<128x128xbf16>, vector<8x128xf32> -> vector<8x128xf32>
    %c0_15 = arith.constant 0 : index
    %c128_16 = arith.constant 128 : index
    %19 = vector.load %arg5[%c0_15, %c128_16] : memref<128x512xbf16, #tpu.memory_space<vmem>>, vector<128x128xbf16>
    %cst_17 = arith.constant dense<0.000000e+00> : vector<8x128xf32>
    %20 = tpu.matmul %1, %19, %cst_17 {dimension_numbers = #tpu.dot_dimension_numbers<[1], [0], [0], [1], [0, 0, 1, 1], [], []>} : vector<8x128xbf16>, vector<128x128xbf16>, vector<8x128xf32> -> vector<8x128xf32>
    %21 = arith.addf %18, %20 : vector<8x128xf32>
    %c0_18 = arith.constant 0 : index
    %c128_19 = arith.constant 128 : index
    %22 = vector.load %arg6[%c0_18, %c128_19] : memref<1x512xf32, #tpu.memory_space<vmem>>, vector<1x128xf32>
    %23 = vector.broadcast %22 : vector<1x128xf32> to vector<8x128xf32>
    %24 = arith.addf %21, %23 : vector<8x128xf32>
    %25 = arith.negf %24 : vector<8x128xf32>
    %26 = math.exp %25 : vector<8x128xf32>
    %cst_20 = arith.constant 1.000000e+00 : f32
    %27 = vector.broadcast %cst_20 : f32 to vector<8x128xf32>
    %28 = arith.addf %27, %26 : vector<8x128xf32>
    %29 = arith.divf %27, %28 : vector<8x128xf32>
    %c0_21 = arith.constant 0 : index
    %c256 = arith.constant 256 : index
    %30 = vector.load %arg4[%c0_21, %c256] : memref<128x512xbf16, #tpu.memory_space<vmem>>, vector<128x128xbf16>
    %cst_22 = arith.constant dense<0.000000e+00> : vector<8x128xf32>
    %31 = tpu.matmul %0, %30, %cst_22 {dimension_numbers = #tpu.dot_dimension_numbers<[1], [0], [0], [1], [0, 0, 1, 1], [], []>} : vector<8x128xbf16>, vector<128x128xbf16>, vector<8x128xf32> -> vector<8x128xf32>
    %c0_23 = arith.constant 0 : index
    %c256_24 = arith.constant 256 : index
    %32 = vector.load %arg5[%c0_23, %c256_24] : memref<128x512xbf16, #tpu.memory_space<vmem>>, vector<128x128xbf16>
    %cst_25 = arith.constant dense<0.000000e+00> : vector<8x128xf32>
    %33 = tpu.matmul %1, %32, %cst_25 {dimension_numbers = #tpu.dot_dimension_numbers<[1], [0], [0], [1], [0, 0, 1, 1], [], []>} : vector<8x128xbf16>, vector<128x128xbf16>, vector<8x128xf32> -> vector<8x128xf32>
    %34 = arith.addf %31, %33 : vector<8x128xf32>
    %c0_26 = arith.constant 0 : index
    %c256_27 = arith.constant 256 : index
    %35 = vector.load %arg6[%c0_26, %c256_27] : memref<1x512xf32, #tpu.memory_space<vmem>>, vector<1x128xf32>
    %36 = vector.broadcast %35 : vector<1x128xf32> to vector<8x128xf32>
    %37 = arith.addf %34, %36 : vector<8x128xf32>
    %38 = math.tanh %37 : vector<8x128xf32>
    %39 = arith.mulf %29, %38 : vector<8x128xf32>
    %40 = arith.addf %16, %39 : vector<8x128xf32>
    %41 = math.tanh %40 : vector<8x128xf32>
    %c0_28 = arith.constant 0 : index
    %c384 = arith.constant 384 : index
    %42 = vector.load %arg4[%c0_28, %c384] : memref<128x512xbf16, #tpu.memory_space<vmem>>, vector<128x128xbf16>
    %cst_29 = arith.constant dense<0.000000e+00> : vector<8x128xf32>
    %43 = tpu.matmul %0, %42, %cst_29 {dimension_numbers = #tpu.dot_dimension_numbers<[1], [0], [0], [1], [0, 0, 1, 1], [], []>} : vector<8x128xbf16>, vector<128x128xbf16>, vector<8x128xf32> -> vector<8x128xf32>
    %c0_30 = arith.constant 0 : index
    %c384_31 = arith.constant 384 : index
    %44 = vector.load %arg5[%c0_30, %c384_31] : memref<128x512xbf16, #tpu.memory_space<vmem>>, vector<128x128xbf16>
    %cst_32 = arith.constant dense<0.000000e+00> : vector<8x128xf32>
    %45 = tpu.matmul %1, %44, %cst_32 {dimension_numbers = #tpu.dot_dimension_numbers<[1], [0], [0], [1], [0, 0, 1, 1], [], []>} : vector<8x128xbf16>, vector<128x128xbf16>, vector<8x128xf32> -> vector<8x128xf32>
    %46 = arith.addf %43, %45 : vector<8x128xf32>
    %c0_33 = arith.constant 0 : index
    %c384_34 = arith.constant 384 : index
    %47 = vector.load %arg6[%c0_33, %c384_34] : memref<1x512xf32, #tpu.memory_space<vmem>>, vector<1x128xf32>
    %48 = vector.broadcast %47 : vector<1x128xf32> to vector<8x128xf32>
    %49 = arith.addf %46, %48 : vector<8x128xf32>
    %50 = arith.negf %49 : vector<8x128xf32>
    %51 = math.exp %50 : vector<8x128xf32>
    %cst_35 = arith.constant 1.000000e+00 : f32
    %52 = vector.broadcast %cst_35 : f32 to vector<8x128xf32>
    %53 = arith.addf %52, %51 : vector<8x128xf32>
    %54 = arith.divf %52, %53 : vector<8x128xf32>
    %55 = arith.mulf %41, %54 : vector<8x128xf32>
    %c0_36 = arith.constant 0 : index
    %c0_37 = arith.constant 0 : index
    %56 = vector.load %arg7[%c0_36, %c0_37] : memref<8x128xf32, #tpu.memory_space<vmem>>, vector<8x128xf32>
    tpu.vector_store %arg7[%c0_36, %c0_37], %40 {strides = array<i32>} : memref<8x128xf32, #tpu.memory_space<vmem>>, vector<8x128xf32>,
    %c0_38 = arith.constant 0 : index
    %c0_39 = arith.constant 0 : index
    %57 = vector.load %arg8[%c0_38, %c0_39] : memref<8x128xf32, #tpu.memory_space<vmem>>, vector<8x128xf32>
    tpu.vector_store %arg8[%c0_38, %c0_39], %55 {strides = array<i32>} : memref<8x128xf32, #tpu.memory_space<vmem>>, vector<8x128xf32>,
    return
  }
  func.func @transform_0(%arg0: i32) -> (i32, i32) {
    %c0_i32 = arith.constant 0 : i32
    %c0_i32_0 = arith.constant 0 : i32
    return %arg0, %c0_i32 : i32, i32
  }
  func.func @transform_1(%arg0: i32) -> (i32, i32) {
    %c0_i32 = arith.constant 0 : i32
    %c0_i32_0 = arith.constant 0 : i32
    return %arg0, %c0_i32 : i32, i32
  }
  func.func @transform_2(%arg0: i32) -> (i32, i32) {
    %c0_i32 = arith.constant 0 : i32
    %c0_i32_0 = arith.constant 0 : i32
    return %arg0, %c0_i32 : i32, i32
  }
  func.func @transform_3(%arg0: i32) -> (i32, i32) {
    %c0_i32 = arith.constant 0 : i32
    %c0_i32_0 = arith.constant 0 : i32
    %c0_i32_1 = arith.constant 0 : i32
    return %c0_i32, %c0_i32_0 : i32, i32
  }
  func.func @transform_4(%arg0: i32) -> (i32, i32) {
    %c0_i32 = arith.constant 0 : i32
    %c0_i32_0 = arith.constant 0 : i32
    %c0_i32_1 = arith.constant 0 : i32
    return %c0_i32, %c0_i32_0 : i32, i32
  }
  func.func @transform_5(%arg0: i32) -> (i32, i32) {
    %c0_i32 = arith.constant 0 : i32
    %c0_i32_0 = arith.constant 0 : i32
    %c0_i32_1 = arith.constant 0 : i32
    return %c0_i32, %c0_i32_0 : i32, i32
  }
  func.func @transform_6(%arg0: i32) -> (i32, i32) {
    %c0_i32 = arith.constant 0 : i32
    %c0_i32_0 = arith.constant 0 : i32
    return %arg0, %c0_i32 : i32, i32
  }
  func.func @transform_7(%arg0: i32) -> (i32, i32) {
    %c0_i32 = arith.constant 0 : i32
    %c0_i32_0 = arith.constant 0 : i32
    return %arg0, %c0_i32 : i32, i32
  }
}

module attributes {stable_mosaic.version = 11 : i64} {
  func.func @lstm_block_kernel(%arg0: i32, %arg1: memref<8x128xbf16, #tpu.memory_space<vmem>>, %arg2: memref<8x128xbf16, #tpu.memory_space<vmem>>, %arg3: memref<8x128xf32, #tpu.memory_space<vmem>>, %arg4: memref<128x512xbf16, #tpu.memory_space<vmem>>, %arg5: memref<128x512xbf16, #tpu.memory_space<vmem>>, %arg6: memref<1x512xf32, #tpu.memory_space<vmem>>, %arg7: memref<8x128xf32, #tpu.memory_space<vmem>>, %arg8: memref<8x128xf32, #tpu.memory_space<vmem>>) attributes {dimension_semantics = [#tpu.dimension_semantics<parallel>], iteration_bounds = array<i64: 1>, scalar_prefetch = 0 : i64, scratch_operands = 0 : i64, tpu.core_type = #tpu.core_type<tc>, window_params = [{transform_indices = @transform_0, window_bounds = array<i64: 8, 128>}, {transform_indices = @transform_1, window_bounds = array<i64: 8, 128>}, {transform_indices = @transform_2, window_bounds = array<i64: 8, 128>}, {pipeline_mode = #tpu.pipeline_mode<synchronous>, transform_indices = @transform_3, window_bounds = array<i64: 128, 512>}, {pipeline_mode = #tpu.pipeline_mode<synchronous>, transform_indices = @transform_4, window_bounds = array<i64: 128, 512>}, {pipeline_mode = #tpu.pipeline_mode<synchronous>, transform_indices = @transform_5, window_bounds = array<i64: 1, 512>}, {transform_indices = @transform_6, window_bounds = array<i64: 8, 128>}, {transform_indices = @transform_7, window_bounds = array<i64: 8, 128>}]} {
    %c0 = arith.constant 0 : index
    %c0_0 = arith.constant 0 : index
    %0 = vector.load %arg1[%c0, %c0_0] : memref<8x128xbf16, #tpu.memory_space<vmem>>, vector<8x128xbf16>
    %c0_1 = arith.constant 0 : index
    %c0_2 = arith.constant 0 : index
    %1 = vector.load %arg2[%c0_1, %c0_2] : memref<8x128xbf16, #tpu.memory_space<vmem>>, vector<8x128xbf16>
    %c0_3 = arith.constant 0 : index
    %c0_4 = arith.constant 0 : index
    %2 = vector.load %arg4[%c0_3, %c0_4] : memref<128x512xbf16, #tpu.memory_space<vmem>>, vector<128x128xbf16>
    %cst = arith.constant dense<0.000000e+00> : vector<8x128xf32>
    %3 = tpu.matmul %0, %2, %cst {dimension_numbers = #tpu.dot_dimension_numbers<[1], [0], [0], [1], [0, 0, 1, 1], [], []>} : vector<8x128xbf16>, vector<128x128xbf16>, vector<8x128xf32> -> vector<8x128xf32>
    %c0_5 = arith.constant 0 : index
    %c0_6 = arith.constant 0 : index
    %4 = vector.load %arg5[%c0_5, %c0_6] : memref<128x512xbf16, #tpu.memory_space<vmem>>, vector<128x128xbf16>
    %cst_7 = arith.constant dense<0.000000e+00> : vector<8x128xf32>
    %5 = tpu.matmul %1, %4, %cst_7 {dimension_numbers = #tpu.dot_dimension_numbers<[1], [0], [0], [1], [0, 0, 1, 1], [], []>} : vector<8x128xbf16>, vector<128x128xbf16>, vector<8x128xf32> -> vector<8x128xf32>
    %6 = arith.addf %3, %5 : vector<8x128xf32>
    %c0_8 = arith.constant 0 : index
    %c0_9 = arith.constant 0 : index
    %7 = vector.load %arg6[%c0_8, %c0_9] : memref<1x512xf32, #tpu.memory_space<vmem>>, vector<1x128xf32>
    %8 = vector.broadcast %7 : vector<1x128xf32> to vector<8x128xf32>
    %9 = arith.addf %6, %8 : vector<8x128xf32>
    %10 = arith.negf %9 : vector<8x128xf32>
    %11 = math.exp %10 : vector<8x128xf32>
    %cst_10 = arith.constant 1.000000e+00 : f32
    %12 = vector.broadcast %cst_10 : f32 to vector<8x128xf32>
    %13 = arith.addf %12, %11 : vector<8x128xf32>
    %14 = arith.divf %12, %13 : vector<8x128xf32>
    %c0_11 = arith.constant 0 : index
    %c0_12 = arith.constant 0 : index
    %15 = vector.load %arg3[%c0_11, %c0_12] : memref<8x128xf32, #tpu.memory_space<vmem>>, vector<8x128xf32>
    %16 = arith.mulf %14, %15 : vector<8x128xf32>
    %c0_13 = arith.constant 0 : index
    %c128 = arith.constant 128 : index
    %17 = vector.load %arg4[%c0_13, %c128] : memref<128x512xbf16, #tpu.memory_space<vmem>>, vector<128x128xbf16>
    %cst_14 = arith.constant dense<0.000000e+00> : vector<8x128xf32>
    %18 = tpu.matmul %0, %17, %cst_14 {dimension_numbers = #tpu.dot_dimension_numbers<[1], [0], [0], [1], [0, 0, 1, 1], [], []>} : vector<8x128xbf16>, vector<128x128xbf16>, vector<8x128xf32> -> vector<8x128xf32>
    %c0_15 = arith.constant 0 : index
    %c128_16 = arith.constant 128 : index
    %19 = vector.load %arg5[%c0_15, %c128_16] : memref<128x512xbf16, #tpu.memory_space<vmem>>, vector<128x128xbf16>
    %cst_17 = arith.constant dense<0.000000e+00> : vector<8x128xf32>
    %20 = tpu.matmul %1, %19, %cst_17 {dimension_numbers = #tpu.dot_dimension_numbers<[1], [0], [0], [1], [0, 0, 1, 1], [], []>} : vector<8x128xbf16>, vector<128x128xbf16>, vector<8x128xf32> -> vector<8x128xf32>
    %21 = arith.addf %18, %20 : vector<8x128xf32>
    %c0_18 = arith.constant 0 : index
    %c128_19 = arith.constant 128 : index
    %22 = vector.load %arg6[%c0_18, %c128_19] : memref<1x512xf32, #tpu.memory_space<vmem>>, vector<1x128xf32>
    %23 = vector.broadcast %22 : vector<1x128xf32> to vector<8x128xf32>
    %24 = arith.addf %21, %23 : vector<8x128xf32>
    %25 = arith.negf %24 : vector<8x128xf32>
    %26 = math.exp %25 : vector<8x128xf32>
    %cst_20 = arith.constant 1.000000e+00 : f32
    %27 = vector.broadcast %cst_20 : f32 to vector<8x128xf32>
    %28 = arith.addf %27, %26 : vector<8x128xf32>
    %29 = arith.divf %27, %28 : vector<8x128xf32>
    %c0_21 = arith.constant 0 : index
    %c256 = arith.constant 256 : index
    %30 = vector.load %arg4[%c0_21, %c256] : memref<128x512xbf16, #tpu.memory_space<vmem>>, vector<128x128xbf16>
    %cst_22 = arith.constant dense<0.000000e+00> : vector<8x128xf32>
    %31 = tpu.matmul %0, %30, %cst_22 {dimension_numbers = #tpu.dot_dimension_numbers<[1], [0], [0], [1], [0, 0, 1, 1], [], []>} : vector<8x128xbf16>, vector<128x128xbf16>, vector<8x128xf32> -> vector<8x128xf32>
    %c0_23 = arith.constant 0 : index
    %c256_24 = arith.constant 256 : index
    %32 = vector.load %arg5[%c0_23, %c256_24] : memref<128x512xbf16, #tpu.memory_space<vmem>>, vector<128x128xbf16>
    %cst_25 = arith.constant dense<0.000000e+00> : vector<8x128xf32>
    %33 = tpu.matmul %1, %32, %cst_25 {dimension_numbers = #tpu.dot_dimension_numbers<[1], [0], [0], [1], [0, 0, 1, 1], [], []>} : vector<8x128xbf16>, vector<128x128xbf16>, vector<8x128xf32> -> vector<8x128xf32>
    %34 = arith.addf %31, %33 : vector<8x128xf32>
    %c0_26 = arith.constant 0 : index
    %c256_27 = arith.constant 256 : index
    %35 = vector.load %arg6[%c0_26, %c256_27] : memref<1x512xf32, #tpu.memory_space<vmem>>, vector<1x128xf32>
    %36 = vector.broadcast %35 : vector<1x128xf32> to vector<8x128xf32>
    %37 = arith.addf %34, %36 : vector<8x128xf32>
    %38 = math.tanh %37 : vector<8x128xf32>
    %39 = arith.mulf %29, %38 : vector<8x128xf32>
    %40 = arith.addf %16, %39 : vector<8x128xf32>
    %41 = math.tanh %40 : vector<8x128xf32>
    %c0_28 = arith.constant 0 : index
    %c384 = arith.constant 384 : index
    %42 = vector.load %arg4[%c0_28, %c384] : memref<128x512xbf16, #tpu.memory_space<vmem>>, vector<128x128xbf16>
    %cst_29 = arith.constant dense<0.000000e+00> : vector<8x128xf32>
    %43 = tpu.matmul %0, %42, %cst_29 {dimension_numbers = #tpu.dot_dimension_numbers<[1], [0], [0], [1], [0, 0, 1, 1], [], []>} : vector<8x128xbf16>, vector<128x128xbf16>, vector<8x128xf32> -> vector<8x128xf32>
    %c0_30 = arith.constant 0 : index
    %c384_31 = arith.constant 384 : index
    %44 = vector.load %arg5[%c0_30, %c384_31] : memref<128x512xbf16, #tpu.memory_space<vmem>>, vector<128x128xbf16>
    %cst_32 = arith.constant dense<0.000000e+00> : vector<8x128xf32>
    %45 = tpu.matmul %1, %44, %cst_32 {dimension_numbers = #tpu.dot_dimension_numbers<[1], [0], [0], [1], [0, 0, 1, 1], [], []>} : vector<8x128xbf16>, vector<128x128xbf16>, vector<8x128xf32> -> vector<8x128xf32>
    %46 = arith.addf %43, %45 : vector<8x128xf32>
    %c0_33 = arith.constant 0 : index
    %c384_34 = arith.constant 384 : index
    %47 = vector.load %arg6[%c0_33, %c384_34] : memref<1x512xf32, #tpu.memory_space<vmem>>, vector<1x128xf32>
    %48 = vector.broadcast %47 : vector<1x128xf32> to vector<8x128xf32>
    %49 = arith.addf %46, %48 : vector<8x128xf32>
    %50 = arith.negf %49 : vector<8x128xf32>
    %51 = math.exp %50 : vector<8x128xf32>
    %cst_35 = arith.constant 1.000000e+00 : f32
    %52 = vector.broadcast %cst_35 : f32 to vector<8x128xf32>
    %53 = arith.addf %52, %51 : vector<8x128xf32>
    %54 = arith.divf %52, %53 : vector<8x128xf32>
    %55 = arith.mulf %41, %54 : vector<8x128xf32>
    %c0_36 = arith.constant 0 : index
    %c0_37 = arith.constant 0 : index
    %56 = vector.load %arg7[%c0_36, %c0_37] : memref<8x128xf32, #tpu.memory_space<vmem>>, vector<8x128xf32>
    tpu.vector_store %arg7[%c0_36, %c0_37], %40 {strides = array<i32>} : memref<8x128xf32, #tpu.memory_space<vmem>>, vector<8x128xf32>,
    %c0_38 = arith.constant 0 : index
    %c0_39 = arith.constant 0 : index
    %57 = vector.load %arg8[%c0_38, %c0_39] : memref<8x128xf32, #tpu.memory_space<vmem>>, vector<8x128xf32>
    tpu.vector_store %arg8[%c0_38, %c0_39], %55 {strides = array<i32>} : memref<8x128xf32, #tpu.memory_space<vmem>>, vector<8x128xf32>,
    return
  }
  func.func @transform_0(%arg0: i32) -> (i32, i32) {
    %c0_i32 = arith.constant 0 : i32
    %c0_i32_0 = arith.constant 0 : i32
    return %arg0, %c0_i32 : i32, i32
  }
  func.func @transform_1(%arg0: i32) -> (i32, i32) {
    %c0_i32 = arith.constant 0 : i32
    %c0_i32_0 = arith.constant 0 : i32
    return %arg0, %c0_i32 : i32, i32
  }
  func.func @transform_2(%arg0: i32) -> (i32, i32) {
    %c0_i32 = arith.constant 0 : i32
    %c0_i32_0 = arith.constant 0 : i32
    return %arg0, %c0_i32 : i32, i32
  }
  func.func @transform_3(%arg0: i32) -> (i32, i32) {
    %c0_i32 = arith.constant 0 : i32
    %c0_i32_0 = arith.constant 0 : i32
    %c0_i32_1 = arith.constant 0 : i32
    return %c0_i32, %c0_i32_0 : i32, i32
  }
  func.func @transform_4(%arg0: i32) -> (i32, i32) {
    %c0_i32 = arith.constant 0 : i32
    %c0_i32_0 = arith.constant 0 : i32
    %c0_i32_1 = arith.constant 0 : i32
    return %c0_i32, %c0_i32_0 : i32, i32
  }
  func.func @transform_5(%arg0: i32) -> (i32, i32) {
    %c0_i32 = arith.constant 0 : i32
    %c0_i32_0 = arith.constant 0 : i32
    %c0_i32_1 = arith.constant 0 : i32
    return %c0_i32, %c0_i32_0 : i32, i32
  }
  func.func @transform_6(%arg0: i32) -> (i32, i32) {
    %c0_i32 = arith.constant 0 : i32
    %c0_i32_0 = arith.constant 0 : i32
    return %arg0, %c0_i32 : i32, i32
  }
  func.func @transform_7(%arg0: i32) -> (i32, i32) {
    %c0_i32 = arith.constant 0 : i32
    %c0_i32_0 = arith.constant 0 : i32
    return %arg0, %c0_i32 : i32, i32
  }
}

</mosaic_0001>

<bundles_post_ra>
// kernel: tpu_custom_call.1
= control target key start
LH: loop header
LB: loop body
LE: loop exit
PB: predicated region body
PF: predicated region fallthrough
CT: control target
= control target key end

     0   :  { %13 = vsyncpa [#allocation3], 0  ;;  %s1824_s0 = inlined_call_operand.hbm [shape: bf16[8,128], index: 0, kind: input, shape index: {}]   ;;  %s1825_s1 = inlined_call_operand.hbm [shape: bf16[8,128], index: 1, kind: input, shape index: {}]   ;;  %s1826_s2 = inlined_call_operand.hbm [shape: f32[8,128], index: 2, kind: input, shape index: {}]   ;;  %s1827_s3 = inlined_call_operand.hbm [shape: bf16[128,512], index: 3, kind: input, shape index: {}]   ;;  %s1828_s4 = inlined_call_operand.hbm [shape: bf16[128,512], index: 4, kind: input, shape index: {}]   ;;  %s1829_s5 = inlined_call_operand.vmem [shape: f32[1,512], index: 5, kind: input, shape index: {}]   ;;  %s1830_s6 = inlined_call_operand.hbm [shape: f32[8,128], index: 6, kind: output, shape index: {0}]   ;;  %s1831_s7 = inlined_call_operand.hbm [shape: f32[8,128], index: 7, kind: output, shape index: {1}]  }
   0x1   :  { %14 = vsyncpa [#allocation6], 0 }
   0x2   :  { %15 = vsyncpa [#allocation9], 0 }
   0x3   :  { %16 = vsyncpa [#allocation4], 0 }
   0x4   :  { %17 = vsyncpa [#allocation13], 0  ;;  %s1572_s24 = smov [#allocation5]   ;;  %s1573_s26 = smov [#allocation8]  }
   0x5   :  { %s34_s25 = sshll.u32 %s1572_s24, 4  ;;  %s53_s27 = sshll.u32 %s1573_s26, 4  ;;  %s35_s25 = int_to_ptr.vmem [resolvable:$true] %s34_s25  ;;  %s1623_s27 = int_to_ptr.vmem [resolvable:$true] %s53_s27 }
   0x6   :  { %s1408_s30 = scalar_lea.hbm %s1825_s1, 64 }
   0x7   :  { %p1409_p0 = scmp.ne.s32.totalorder %s1825_s1, %s1408_s30  ;;  %p1412_p1 = scmp.lt.u32.totalorder %s1408_s30, %s1825_s1 }
   0x9   :  { %p1414_p2 = pnand %p1412_p1, %p1409_p0 }
   0xb   :  { %1417 = shalt.err (!%p1414_p2)
}
   0xc   :  { %s1418_s12 = scalar_lea.vmem %s35_s25, 64  ;;  %p1423_p4 = scmp.lt.s32.totalorder %s35_s25, %s35_s25 }
   0xd   :  { %p1419_p3 = scmp.ne.s32.totalorder %s35_s25, %s1418_s12  ;;  %p1424_p5 = scmp.lt.s32.totalorder %s1418_s12, %s1418_s12 }
   0xf   :  { %p1425_p6 = por %p1424_p5, %p1423_p4 }
  0x11   :  { %p1426_p7 = pnand %p1425_p6, %p1419_p3 }
  0x13   :  { %1429 = shalt.err (!%p1426_p7)
}
  0x14   :  { %37 = dma.hbm_to_vmem [thread:$0]  %s1825_s1, 64, %s35_s25, [#allocation6]  }
  0x15   :  { %s1430_s17 = scalar_lea.hbm %s1827_s3, 4096 }
  0x16   :  { %p1431_p8 = scmp.ne.s32.totalorder %s1827_s3, %s1430_s17  ;;  %p1434_p9 = scmp.lt.u32.totalorder %s1430_s17, %s1827_s3 }
  0x18   :  { %p1436_p10 = pnand %p1434_p9, %p1431_p8 }
  0x1a   :  { %1439 = shalt.err (!%p1436_p10)
}
  0x1b   :  { %s1440_s22 = scalar_lea.vmem %s1623_s27, 4096  ;;  %p1445_p12 = scmp.lt.s32.totalorder %s1623_s27, %s1623_s27 }
  0x1c   :  { %p1441_p11 = scmp.ne.s32.totalorder %s1623_s27, %s1440_s22  ;;  %p1446_p13 = scmp.lt.s32.totalorder %s1440_s22, %s1440_s22 }
  0x1e   :  { %p1447_p0 = por %p1446_p13, %p1445_p12 }
  0x20   :  { %p1448_p1 = pnand %p1447_p0, %p1441_p11 }
  0x22   :  { %1451 = shalt.err (!%p1448_p1)
}
  0x23   :  { %s1574_s1 = smov 256   ;;  %s1575_s23 = smov 16  }
  0x24   :  { %59 = dma.hbm_to_vmem [thread:$0]  %s1827_s3, 4096, %s1623_s27, [#allocation9], %s1574_s1, %s1574_s1, %s1575_s23  }
  0x25   :  { %s1576_s26 = smov [#allocation2]   ;;  %s1577_s29 = smov [#allocation7]  }
  0x26   :  { %s24_s28 = sshll.u32 %s1576_s26, 4  ;;  %s44_s30 = sshll.u32 %s1577_s29, 4  ;;  %s25_s28 = int_to_ptr.vmem [resolvable:$true] %s24_s28  ;;  %s45_s30 = int_to_ptr.vmem [resolvable:$true] %s44_s30 }
  0x27   :  { %s1452_s10 = scalar_lea.hbm %s1824_s0, 64 }
  0x28   :  { %p1453_p2 = scmp.ne.s32.totalorder %s1824_s0, %s1452_s10  ;;  %p1456_p3 = scmp.lt.u32.totalorder %s1452_s10, %s1824_s0 }
  0x2a   :  { %p1458_p4 = pnand %p1456_p3, %p1453_p2 }
  0x2c   :  { %1461 = shalt.err (!%p1458_p4)
}
  0x2d   :  { %s1462_s3 = scalar_lea.vmem %s25_s28, 64  ;;  %p1467_p6 = scmp.lt.s32.totalorder %s25_s28, %s25_s28 }
  0x2e   :  { %p1463_p5 = scmp.ne.s32.totalorder %s25_s28, %s1462_s3  ;;  %p1468_p7 = scmp.lt.s32.totalorder %s1462_s3, %s1462_s3 }
  0x30   :  { %p1469_p8 = por %p1468_p7, %p1467_p6 }
  0x32   :  { %p1470_p9 = pnand %p1469_p8, %p1463_p5 }
  0x34   :  { %1473 = shalt.err (!%p1470_p9)
}
  0x35   :  { %27 = dma.hbm_to_vmem [thread:$0]  %s1824_s0, 64, %s25_s28, [#allocation3]  }
  0x36   :  { %s1474_s18 = scalar_lea.hbm %s1826_s2, 128 }
  0x37   :  { %p1475_p10 = scmp.ne.s32.totalorder %s1826_s2, %s1474_s18  ;;  %p1478_p11 = scmp.lt.u32.totalorder %s1474_s18, %s1826_s2 }
  0x39   :  { %p1480_p12 = pnand %p1478_p11, %p1475_p10 }
  0x3b   :  { %1483 = shalt.err (!%p1480_p12)
}
  0x3c   :  { %s1484_s24 = scalar_lea.vmem %s45_s30, 128  ;;  %p1489_p0 = scmp.lt.s32.totalorder %s45_s30, %s45_s30 }
  0x3d   :  { %p1485_p13 = scmp.ne.s32.totalorder %s45_s30, %s1484_s24  ;;  %p1490_p1 = scmp.lt.s32.totalorder %s1484_s24, %s1484_s24 }
  0x3f   :  { %p1491_p2 = por %p1490_p1, %p1489_p0 }
  0x41   :  { %p1492_p3 = pnand %p1491_p2, %p1485_p13 }
  0x43   :  { %1495 = shalt.err (!%p1492_p3)
}
  0x44   :  { %47 = dma.hbm_to_vmem [thread:$0]  %s1826_s2, 128, %s45_s30, [#allocation6]  }
  0x45   :  { %s1578_s26 = smov [#allocation10]   ;;  %s1496_s9 = scalar_lea.hbm %s1828_s4, 4096 }
  0x46   :  { %s65_s28 = sshll.u32 %s1578_s26, 4  ;;  %p1497_p4 = scmp.ne.s32.totalorder %s1828_s4, %s1496_s9  ;;  %s66_s28 = int_to_ptr.vmem [resolvable:$true] %s65_s28 }
  0x47   :  { %p1500_p5 = scmp.lt.u32.totalorder %s1496_s9, %s1828_s4 }
  0x49   :  { %p1502_p6 = pnand %p1500_p5, %p1497_p4 }
  0x4b   :  { %1505 = shalt.err (!%p1502_p6)
}
  0x4c   :  { %s1506_s14 = scalar_lea.vmem %s66_s28, 4096  ;;  %p1511_p8 = scmp.lt.s32.totalorder %s66_s28, %s66_s28 }
  0x4d   :  { %p1507_p7 = scmp.ne.s32.totalorder %s66_s28, %s1506_s14  ;;  %p1512_p9 = scmp.lt.s32.totalorder %s1506_s14, %s1506_s14 }
  0x4f   :  { %p1513_p10 = por %p1512_p9, %p1511_p8 }
  0x51   :  { %p1514_p11 = pnand %p1513_p10, %p1507_p7 }
  0x53   :  { %1517 = shalt.err (!%p1514_p11)
}
  0x54   :  { %71 = dma.hbm_to_vmem [thread:$0]  %s1828_s4, 4096, %s66_s28, [#allocation9], %s1574_s1, %s1574_s1, %s1575_s23  }
  0x55   :  { %1562 = dma.done.wait [#allocation3], 64  }
  0x56   :  { %1563 = vsyncadd [#allocation3], 4294967232 }
  0x57   :  { %1564 = dma.done.wait [#allocation6], 192  }
  0x58   :  { %1565 = vsyncadd [#allocation6], 4294967104 }
  0x59   :  { %1566 = dma.done.wait [#allocation9], 8192  }
  0x5a   :  { %1567 = vsyncadd [#allocation9], 4294959104  ;;  %v1579_v0 = vmov 0.0   ;;  %vm1580_vm0 = vmmov 0   ;;  %v1328_v1 = vld [vmem:[#allocation10] ss:$16 sps:$4 sm:$0xff]  }
  0x5b   :  { %1157 = vmatprep.subr.bf16.mxu0 %v1579_v0  ;;  %1177 = vmatprep.subr.bf16.mxu1 %v1579_v0  ;;  %v1329_v2 = vld [vmem:[#allocation8] ss:$16 sps:$4 sm:$0xff]   ;;  %v1716_v17 = vld [vmem:[#allocation5] sm:$0xf]  ;;  %v1360_v35 = vld [vmem:[#allocation10 + $0x8] ss:$16 sps:$4 sm:$0xff]  }
  0x5c   :  { %1173 = vmatprep.mubr.msk.bf16.mxu0 %vm1580_vm0, %v1579_v0  ;;  %1193 = vmatprep.mubr.msk.bf16.mxu1 %vm1580_vm0, %v1579_v0  ;;  %v1330_v3 = vld [vmem:[#allocation10 + $0x20] ss:$16 sps:$4 sm:$0xff]   ;;  %v1344_v19 = vld [vmem:[#allocation10 + $0x4] ss:$16 sps:$4 sm:$0xff]   ;;  %v1361_v36 = vld [vmem:[#allocation8 + $0x8] ss:$16 sps:$4 sm:$0xff]  }
  0x5d   :  { %1158 = vmatpush3.bf16.msra.mxu0 %v1328_v1  ;;  %1178 = vmatpush3.bf16.msra.mxu1 %v1329_v2  ;;  %v1331_v4 = vld [vmem:[#allocation8 + $0x20] ss:$16 sps:$4 sm:$0xff]   ;;  %v1345_v20 = vld [vmem:[#allocation8 + $0x4] ss:$16 sps:$4 sm:$0xff]   ;;  %v1362_v37 = vld [vmem:[#allocation10 + $0x28] ss:$16 sps:$4 sm:$0xff]  }
  0x5e   :  { %1159 = vmatprep.subr.bf16.mxu0 %v1579_v0  ;;  %1179 = vmatprep.subr.bf16.mxu1 %v1579_v0  ;;  %v1332_v5 = vld [vmem:[#allocation10 + $0x40] ss:$16 sps:$4 sm:$0xff]   ;;  %v1346_v21 = vld [vmem:[#allocation10 + $0x24] ss:$16 sps:$4 sm:$0xff]   ;;  %v1363_v38 = vld [vmem:[#allocation8 + $0x28] ss:$16 sps:$4 sm:$0xff]  }
  0x5f   :  { %v1333_v6 = vld [vmem:[#allocation8 + $0x40] ss:$16 sps:$4 sm:$0xff]   ;;  %v1347_v22 = vld [vmem:[#allocation8 + $0x24] ss:$16 sps:$4 sm:$0xff]   ;;  %v1364_v39 = vld [vmem:[#allocation10 + $0x48] ss:$16 sps:$4 sm:$0xff]  }
  0x60   :  { %v1334_v7 = vld [vmem:[#allocation10 + $0x60] ss:$16 sps:$4 sm:$0xff]   ;;  %v1348_v23 = vld [vmem:[#allocation10 + $0x44] ss:$16 sps:$4 sm:$0xff]   ;;  %v1365_v40 = vld [vmem:[#allocation8 + $0x48] ss:$16 sps:$4 sm:$0xff]  }
  0x61   :  { %1160 = vmatpush3.bf16.msra.mxu0 %v1330_v3  ;;  %1180 = vmatpush3.bf16.msra.mxu1 %v1331_v4  ;;  %v1335_v8 = vld [vmem:[#allocation8 + $0x60] ss:$16 sps:$4 sm:$0xff]   ;;  %v1349_v24 = vld [vmem:[#allocation8 + $0x44] ss:$16 sps:$4 sm:$0xff]   ;;  %v1366_v41 = vld [vmem:[#allocation10 + $0x68] ss:$16 sps:$4 sm:$0xff]  }
  0x62   :  { %1161 = vmatprep.subr.bf16.mxu0 %v1579_v0  ;;  %1181 = vmatprep.subr.bf16.mxu1 %v1579_v0  ;;  %v1336_v9 = vld [vmem:[#allocation10 + $0x80] ss:$16 sps:$4 sm:$0xff]   ;;  %v1350_v25 = vld [vmem:[#allocation10 + $0x64] ss:$16 sps:$4 sm:$0xff]   ;;  %v1367_v42 = vld [vmem:[#allocation8 + $0x68] ss:$16 sps:$4 sm:$0xff]  }
  0x63   :  { %v1337_v10 = vld [vmem:[#allocation8 + $0x80] ss:$16 sps:$4 sm:$0xff]   ;;  %v1351_v26 = vld [vmem:[#allocation8 + $0x64] ss:$16 sps:$4 sm:$0xff]   ;;  %v1368_v43 = vld [vmem:[#allocation10 + $0x88] ss:$16 sps:$4 sm:$0xff]  }
  0x64   :  { %v1338_v11 = vld [vmem:[#allocation10 + $0xa0] ss:$16 sps:$4 sm:$0xff]   ;;  %v1352_v27 = vld [vmem:[#allocation10 + $0x84] ss:$16 sps:$4 sm:$0xff]   ;;  %v1369_v44 = vld [vmem:[#allocation8 + $0x88] ss:$16 sps:$4 sm:$0xff]  }
  0x65   :  { %1162 = vmatpush3.bf16.msra.mxu0 %v1332_v5  ;;  %1182 = vmatpush3.bf16.msra.mxu1 %v1333_v6  ;;  %v1339_v12 = vld [vmem:[#allocation8 + $0xa0] ss:$16 sps:$4 sm:$0xff]   ;;  %v1353_v28 = vld [vmem:[#allocation8 + $0x84] ss:$16 sps:$4 sm:$0xff]   ;;  %v1370_v45 = vld [vmem:[#allocation10 + $0xa8] ss:$16 sps:$4 sm:$0xff]  }
  0x66   :  { %1163 = vmatprep.subr.bf16.mxu0 %v1579_v0  ;;  %1183 = vmatprep.subr.bf16.mxu1 %v1579_v0  ;;  %v1340_v13 = vld [vmem:[#allocation10 + $0xc0] ss:$16 sps:$4 sm:$0xff]   ;;  %v1354_v29 = vld [vmem:[#allocation10 + $0xa4] ss:$16 sps:$4 sm:$0xff]   ;;  %v1371_v46 = vld [vmem:[#allocation8 + $0xa8] ss:$16 sps:$4 sm:$0xff]  }
  0x67   :  { %v1341_v14 = vld [vmem:[#allocation8 + $0xc0] ss:$16 sps:$4 sm:$0xff]   ;;  %v1355_v30 = vld [vmem:[#allocation8 + $0xa4] ss:$16 sps:$4 sm:$0xff]   ;;  %v1372_v47 = vld [vmem:[#allocation10 + $0xc8] ss:$16 sps:$4 sm:$0xff]  }
  0x68   :  { %v1342_v15 = vld [vmem:[#allocation10 + $0xe0] ss:$16 sps:$4 sm:$0xff]   ;;  %v1356_v31 = vld [vmem:[#allocation10 + $0xc4] ss:$16 sps:$4 sm:$0xff]   ;;  %v1373_v48 = vld [vmem:[#allocation8 + $0xc8] ss:$16 sps:$4 sm:$0xff]  }
  0x69   :  { %1164 = vmatpush3.bf16.msra.mxu0 %v1334_v7  ;;  %1184 = vmatpush3.bf16.msra.mxu1 %v1335_v8  ;;  %v1343_v16 = vld [vmem:[#allocation8 + $0xe0] ss:$16 sps:$4 sm:$0xff]   ;;  %v1357_v32 = vld [vmem:[#allocation8 + $0xc4] ss:$16 sps:$4 sm:$0xff]   ;;  %v1374_v49 = vld [vmem:[#allocation10 + $0xe8] ss:$16 sps:$4 sm:$0xff]  }
  0x6a   :  { %1165 = vmatprep.subr.bf16.mxu0 %v1579_v0  ;;  %1185 = vmatprep.subr.bf16.mxu1 %v1579_v0  ;;  %v1718_v18 = vld [vmem:[#allocation2] sm:$0xf]  ;;  %v1358_v33 = vld [vmem:[#allocation10 + $0xe4] ss:$16 sps:$4 sm:$0xff]   ;;  %v1375_v50 = vld [vmem:[#allocation8 + $0xe8] ss:$16 sps:$4 sm:$0xff]  }
  0x6b   :  { %v1359_v34 = vld [vmem:[#allocation8 + $0xe4] ss:$16 sps:$4 sm:$0xff]   ;;  %v1376_v51 = vld [vmem:[#allocation10 + $0xc] ss:$16 sps:$4 sm:$0xff]   ;;  %s1581_s16 = smov [#allocation11]  }
  0x6c   :  { %v1377_v52 = vld [vmem:[#allocation8 + $0xc] ss:$16 sps:$4 sm:$0xff]   ;;  %s989_s17 = sshll.u32 %s1581_s16, 4  ;;  %s990_s17 = int_to_ptr.vmem [resolvable:$true] %s989_s17 }
  0x6d   :  { %1166 = vmatpush3.bf16.msra.mxu0 %v1336_v9  ;;  %1186 = vmatpush3.bf16.msra.mxu1 %v1337_v10  ;;  %v1378_v53 = vld [vmem:[#allocation10 + $0x2c] ss:$16 sps:$4 sm:$0xff]   ;;  %s1518_s18 = scalar_lea.vmem %s990_s17, 128  ;;  %p1523_p13 = scmp.lt.s32.totalorder %s990_s17, %s990_s17 }
  0x6e   :  { %1167 = vmatprep.subr.bf16.mxu0 %v1579_v0  ;;  %1187 = vmatprep.subr.bf16.mxu1 %v1579_v0  ;;  %v1379_v54 = vld [vmem:[#allocation8 + $0x2c] ss:$16 sps:$4 sm:$0xff]   ;;  %p1519_p12 = scmp.ne.s32.totalorder %s990_s17, %s1518_s18  ;;  %p1524_p0 = scmp.lt.s32.totalorder %s1518_s18, %s1518_s18 }
  0x6f   :  { %v1380_v55 = vld [vmem:[#allocation10 + $0x4c] ss:$16 sps:$4 sm:$0xff]  }
  0x70   :  { %v1381_v56 = vld [vmem:[#allocation8 + $0x4c] ss:$16 sps:$4 sm:$0xff]   ;;  %p1525_p1 = por %p1524_p0, %p1523_p13 }
  0x71   :  { %1168 = vmatpush3.bf16.msra.mxu0 %v1338_v11  ;;  %1188 = vmatpush3.bf16.msra.mxu1 %v1339_v12  ;;  %v1382_v57 = vld [vmem:[#allocation10 + $0x6c] ss:$16 sps:$4 sm:$0xff]  }
  0x72   :  { %1169 = vmatprep.subr.bf16.mxu0 %v1579_v0  ;;  %1189 = vmatprep.subr.bf16.mxu1 %v1579_v0  ;;  %v1383_v58 = vld [vmem:[#allocation8 + $0x6c] ss:$16 sps:$4 sm:$0xff]   ;;  %p1526_p2 = pnand %p1525_p1, %p1519_p12 }
  0x73   :  { %v1384_v59 = vld [vmem:[#allocation10 + $0x8c] ss:$16 sps:$4 sm:$0xff]  }
  0x74   :  { %v1385_v60 = vld [vmem:[#allocation8 + $0x8c] ss:$16 sps:$4 sm:$0xff]  }
  0x75   :  { %1170 = vmatpush3.bf16.msra.mxu0 %v1340_v13  ;;  %1190 = vmatpush3.bf16.msra.mxu1 %v1341_v14  ;;  %v1386_v61 = vld [vmem:[#allocation10 + $0xac] ss:$16 sps:$4 sm:$0xff]  }
  0x76   :  { %1171 = vmatprep.subr.bf16.mxu0 %v1579_v0  ;;  %1191 = vmatprep.subr.bf16.mxu1 %v1579_v0  ;;  %v1387_v62 = vld [vmem:[#allocation8 + $0xac] ss:$16 sps:$4 sm:$0xff]  }
  0x77   :  { %v1388_v63 = vld [vmem:[#allocation10 + $0xcc] ss:$16 sps:$4 sm:$0xff]  }
  0x78   :  { %v1389_v1 = vld [vmem:[#allocation8 + $0xcc] ss:$16 sps:$4 sm:$0xff]  }
  0x79   :  { %1172 = vmatpush3.bf16.msra.mxu0 %v1342_v15  ;;  %1192 = vmatpush3.bf16.msra.mxu1 %v1343_v16  ;;  %v1390_v2 = vld [vmem:[#allocation10 + $0xec] ss:$16 sps:$4 sm:$0xff]  }
  0x7a   :  { %1197 = vmatprep.subr.bf16.mxu0 %v1579_v0  ;;  %1217 = vmatprep.subr.bf16.mxu1 %v1579_v0  ;;  %v1391_v3 = vld [vmem:[#allocation8 + $0xec] ss:$16 sps:$4 sm:$0xff]  }
  0x7c   :  { %1174 = vmatmul.mubr.bf16.vlgmr.msra.gmra.mrb[0].mxu0 %v1716_v17  ;;  %1194 = vmatmul.mubr.bf16.vlgmr.msra.gmra.mrb[0].mxu1 %v1718_v18 }
  0x7d   :  { %1198 = vmatpush3.bf16.msra.mxu0 %v1344_v19  ;;  %1218 = vmatpush3.bf16.msra.mxu1 %v1345_v20 }
  0x7e   :  { %1199 = vmatprep.subr.bf16.mxu0 %v1579_v0  ;;  %1219 = vmatprep.subr.bf16.mxu1 %v1579_v0 }
  0x7f   :  { %1213 = vmatprep.mubr.msk.bf16.mxu0 %vm1580_vm0, %v1579_v0  ;;  %1233 = vmatprep.mubr.msk.bf16.mxu1 %vm1580_vm0, %v1579_v0 }
  0x81   :  { %1200 = vmatpush3.bf16.msra.mxu0 %v1346_v21  ;;  %1220 = vmatpush3.bf16.msra.mxu1 %v1347_v22  ;;  %v1048_v22 = vld [vmem:[%s1829_s5 + $0x1] ss:$0 sm:$0xff] }
  0x82   :  { %1201 = vmatprep.subr.bf16.mxu0 %v1579_v0  ;;  %1221 = vmatprep.subr.bf16.mxu1 %v1579_v0 }
  0x85   :  { %1202 = vmatpush3.bf16.msra.mxu0 %v1348_v23  ;;  %1222 = vmatpush3.bf16.msra.mxu1 %v1349_v24 }
  0x86   :  { %1203 = vmatprep.subr.bf16.mxu0 %v1579_v0  ;;  %1223 = vmatprep.subr.bf16.mxu1 %v1579_v0 }
  0x89   :  { %1204 = vmatpush3.bf16.msra.mxu0 %v1350_v25  ;;  %1224 = vmatpush3.bf16.msra.mxu1 %v1351_v26 }
  0x8a   :  { %1205 = vmatprep.subr.bf16.mxu0 %v1579_v0  ;;  %1225 = vmatprep.subr.bf16.mxu1 %v1579_v0 }
  0x8d   :  { %1206 = vmatpush3.bf16.msra.mxu0 %v1352_v27  ;;  %1226 = vmatpush3.bf16.msra.mxu1 %v1353_v28 }
  0x8e   :  { %1207 = vmatprep.subr.bf16.mxu0 %v1579_v0  ;;  %1227 = vmatprep.subr.bf16.mxu1 %v1579_v0 }
  0x91   :  { %1208 = vmatpush3.bf16.msra.mxu0 %v1354_v29  ;;  %1228 = vmatpush3.bf16.msra.mxu1 %v1355_v30 }
  0x92   :  { %1209 = vmatprep.subr.bf16.mxu0 %v1579_v0  ;;  %1229 = vmatprep.subr.bf16.mxu1 %v1579_v0 }
  0x95   :  { %1210 = vmatpush3.bf16.msra.mxu0 %v1356_v31  ;;  %1230 = vmatpush3.bf16.msra.mxu1 %v1357_v32 }
  0x96   :  { %1211 = vmatprep.subr.bf16.mxu0 %v1579_v0  ;;  %1231 = vmatprep.subr.bf16.mxu1 %v1579_v0 }
  0x99   :  { %1212 = vmatpush3.bf16.msra.mxu0 %v1358_v33  ;;  %1232 = vmatpush3.bf16.msra.mxu1 %v1359_v34  ;;  %v1066_v33 = vld [vmem:[%s1829_s5 + $0x2] ss:$0 sm:$0xff] }
  0x9a   :  { %1237 = vmatprep.subr.bf16.mxu0 %v1579_v0  ;;  %1257 = vmatprep.subr.bf16.mxu1 %v1579_v0 }
  0x9c   :  { %1214 = vmatmul.mubr.bf16.vlgmr.msra.gmra.mrb[4].mxu0 %v1716_v17  ;;  %1234 = vmatmul.mubr.bf16.vlgmr.msra.gmra.mrb[4].mxu1 %v1718_v18 }
  0x9d   :  { %1238 = vmatpush3.bf16.msra.mxu0 %v1360_v35  ;;  %1258 = vmatpush3.bf16.msra.mxu1 %v1361_v36 }
  0x9e   :  { %1239 = vmatprep.subr.bf16.mxu0 %v1579_v0  ;;  %1259 = vmatprep.subr.bf16.mxu1 %v1579_v0 }
  0x9f   :  { %1253 = vmatprep.mubr.msk.bf16.mxu0 %vm1580_vm0, %v1579_v0  ;;  %1273 = vmatprep.mubr.msk.bf16.mxu1 %vm1580_vm0, %v1579_v0 }
  0xa1   :  { %1240 = vmatpush3.bf16.msra.mxu0 %v1362_v37  ;;  %1260 = vmatpush3.bf16.msra.mxu1 %v1363_v38 }
  0xa2   :  { %1241 = vmatprep.subr.bf16.mxu0 %v1579_v0  ;;  %1261 = vmatprep.subr.bf16.mxu1 %v1579_v0 }
  0xa5   :  { %1242 = vmatpush3.bf16.msra.mxu0 %v1364_v39  ;;  %1262 = vmatpush3.bf16.msra.mxu1 %v1365_v40 }
  0xa6   :  { %1243 = vmatprep.subr.bf16.mxu0 %v1579_v0  ;;  %1263 = vmatprep.subr.bf16.mxu1 %v1579_v0 }
  0xa9   :  { %1244 = vmatpush3.bf16.msra.mxu0 %v1366_v41  ;;  %1264 = vmatpush3.bf16.msra.mxu1 %v1367_v42 }
  0xaa   :  { %1245 = vmatprep.subr.bf16.mxu0 %v1579_v0  ;;  %1265 = vmatprep.subr.bf16.mxu1 %v1579_v0 }
  0xad   :  { %1246 = vmatpush3.bf16.msra.mxu0 %v1368_v43  ;;  %1266 = vmatpush3.bf16.msra.mxu1 %v1369_v44  ;;  %v314_v43 = vld [vmem:[#allocation7] sm:$0xff] }
  0xae   :  { %1247 = vmatprep.subr.bf16.mxu0 %v1579_v0  ;;  %1267 = vmatprep.subr.bf16.mxu1 %v1579_v0 }
  0xb1   :  { %1248 = vmatpush3.bf16.msra.mxu0 %v1370_v45  ;;  %1268 = vmatpush3.bf16.msra.mxu1 %v1371_v46 }
  0xb2   :  { %1249 = vmatprep.subr.bf16.mxu0 %v1579_v0  ;;  %1269 = vmatprep.subr.bf16.mxu1 %v1579_v0 }
  0xb5   :  { %1250 = vmatpush3.bf16.msra.mxu0 %v1372_v47  ;;  %1270 = vmatpush3.bf16.msra.mxu1 %v1373_v48 }
  0xb6   :  { %1251 = vmatprep.subr.bf16.mxu0 %v1579_v0  ;;  %1271 = vmatprep.subr.bf16.mxu1 %v1579_v0 }
  0xb9   :  { %1252 = vmatpush3.bf16.msra.mxu0 %v1374_v49  ;;  %1272 = vmatpush3.bf16.msra.mxu1 %v1375_v50 }
  0xba   :  { %1277 = vmatprep.subr.bf16.mxu0 %v1579_v0  ;;  %1297 = vmatprep.subr.bf16.mxu1 %v1579_v0 }
  0xbc   :  { %1254 = vmatmul.mubr.bf16.vlgmr.msra.gmra.mrb[8].mxu0 %v1716_v17  ;;  %1274 = vmatmul.mubr.bf16.vlgmr.msra.gmra.mrb[8].mxu1 %v1718_v18 }
  0xbd   :  { %1278 = vmatpush3.bf16.msra.mxu0 %v1376_v51  ;;  %1298 = vmatpush3.bf16.msra.mxu1 %v1377_v52 }
  0xbe   :  { %1279 = vmatprep.subr.bf16.mxu0 %v1579_v0  ;;  %1299 = vmatprep.subr.bf16.mxu1 %v1579_v0 }
  0xbf   :  { %1293 = vmatprep.mubr.msk.bf16.mxu0 %vm1580_vm0, %v1579_v0  ;;  %1313 = vmatprep.mubr.msk.bf16.mxu1 %vm1580_vm0, %v1579_v0 }
  0xc1   :  { %1280 = vmatpush3.bf16.msra.mxu0 %v1378_v53  ;;  %1300 = vmatpush3.bf16.msra.mxu1 %v1379_v54 }
  0xc2   :  { %1281 = vmatprep.subr.bf16.mxu0 %v1579_v0  ;;  %1301 = vmatprep.subr.bf16.mxu1 %v1579_v0 }
  0xc5   :  { %1282 = vmatpush3.bf16.msra.mxu0 %v1380_v55  ;;  %1302 = vmatpush3.bf16.msra.mxu1 %v1381_v56 }
  0xc6   :  { %1283 = vmatprep.subr.bf16.mxu0 %v1579_v0  ;;  %1303 = vmatprep.subr.bf16.mxu1 %v1579_v0 }
  0xc9   :  { %1284 = vmatpush3.bf16.msra.mxu0 %v1382_v57  ;;  %1304 = vmatpush3.bf16.msra.mxu1 %v1383_v58 }
  0xca   :  { %1285 = vmatprep.subr.bf16.mxu0 %v1579_v0  ;;  %1305 = vmatprep.subr.bf16.mxu1 %v1579_v0 }
  0xcd   :  { %1286 = vmatpush3.bf16.msra.mxu0 %v1384_v59  ;;  %1306 = vmatpush3.bf16.msra.mxu1 %v1385_v60 }
  0xce   :  { %1287 = vmatprep.subr.bf16.mxu0 %v1579_v0  ;;  %1307 = vmatprep.subr.bf16.mxu1 %v1579_v0 }
  0xd1   :  { %1288 = vmatpush3.bf16.msra.mxu0 %v1386_v61  ;;  %1308 = vmatpush3.bf16.msra.mxu1 %v1387_v62 }
  0xd2   :  { %1289 = vmatprep.subr.bf16.mxu0 %v1579_v0  ;;  %1309 = vmatprep.subr.bf16.mxu1 %v1579_v0 }
  0xd5   :  { %1290 = vmatpush3.bf16.msra.mxu0 %v1388_v63  ;;  %1310 = vmatpush3.bf16.msra.mxu1 %v1389_v1 }
  0xd6   :  { %1291 = vmatprep.subr.bf16.mxu0 %v1579_v0  ;;  %1311 = vmatprep.subr.bf16.mxu1 %v1579_v0 }
  0xd9   :  { %1292 = vmatpush3.bf16.msra.mxu0 %v1390_v2  ;;  %1312 = vmatpush3.bf16.msra.mxu1 %v1391_v3 }
  0xdc   :  { %1294 = vmatmul.mubr.bf16.vlgmr.msra.gmra.mrb[12].mxu0 %v1716_v17  ;;  %1314 = vmatmul.mubr.bf16.vlgmr.msra.gmra.mrb[12].mxu1 %v1718_v18  ;;  %v1030_v18 = vld [vmem:[%s1829_s5] ss:$0 sm:$0xff] }
 0x14f   :  { %v206_v4 = vpop.f32.mrb[0].mxu0  ;;  %v294_v5 = vpop.f32.mrb[0].mxu1 }
 0x150   :  { %v1175_v6 = vpop.f32.mrb[1].mxu0  ;;  %v295_v7 = vadd.f32 %v294_v5, %v206_v4  ;;  %v1195_v8 = vpop.f32.mrb[1].mxu1 }
 0x151   :  { %v209_v9 = vpop.f32.mrb[2].mxu0  ;;  %v297_v10 = vpop.f32.mrb[2].mxu1 }
 0x152   :  { %v1176_v11 = vpop.f32.mrb[3].mxu0  ;;  %v1196_v12 = vpop.f32.mrb[3].mxu1  ;;  %v307_v23 = vadd.f32 %v1030_v18, %v295_v7 }
 0x154   :  { %v1031_v25 = vmul.f32 -1.442695, %v307_v23 }
 0x156   :  { %1392 = vpow2.f32 %v1031_v25 }
 0x160   :  { %v1393_v27 = vpop.eup %1392 }
 0x161   :  { %v311_v29 = vadd.f32 1.0, %v1393_v27 }
 0x16f   :  { %v430_v13 = vpop.f32.mrb[4].mxu0  ;;  %v518_v14 = vpop.f32.mrb[4].mxu1 }
 0x170   :  { %v1215_v15 = vpop.f32.mrb[5].mxu0  ;;  %v519_v16 = vadd.f32 %v518_v14, %v430_v13  ;;  %v1235_v0 = vpop.f32.mrb[5].mxu1 }
 0x171   :  { %v433_v19 = vpop.f32.mrb[6].mxu0  ;;  %v521_v20 = vpop.f32.mrb[6].mxu1 }
 0x172   :  { %v1216_v21 = vpop.f32.mrb[7].mxu0  ;;  %v1236_v17 = vpop.f32.mrb[7].mxu1  ;;  %v531_v24 = vadd.f32 %v1048_v22, %v519_v16 }
 0x174   :  { %v1049_v26 = vmul.f32 -1.442695, %v531_v24 }
 0x176   :  { %1394 = vpow2.f32 %v1049_v26 }
 0x177   :  { %1396 = vrcp.f32 %v311_v29 }
 0x180   :  { %v1395_v28 = vpop.eup %1394 }
 0x181   :  { %v535_v31 = vadd.f32 1.0, %v1395_v28  ;;  %v1397_v42 = vpop.eup %1396 }
 0x182   :  { %v315_v46 = vmul.f32 %v1397_v42, %v314_v43 }
 0x183   :  { %1398 = vrcp.f32 %v535_v31 }
 0x18d   :  { %v1399_v44 = vpop.eup %1398 }
 0x18f   :  { %v652_v30 = vpop.f32.mrb[8].mxu0  ;;  %v740_v32 = vpop.f32.mrb[8].mxu1 }
 0x190   :  { %v1255_v34 = vpop.f32.mrb[9].mxu0  ;;  %v741_v35 = vadd.f32 %v740_v32, %v652_v30  ;;  %v1275_v36 = vpop.f32.mrb[9].mxu1 }
 0x191   :  { %v655_v37 = vpop.f32.mrb[10].mxu0  ;;  %v743_v38 = vpop.f32.mrb[10].mxu1 }
 0x192   :  { %v1256_v39 = vpop.f32.mrb[11].mxu0  ;;  %v753_v40 = vadd.f32 %v1066_v33, %v741_v35  ;;  %v1276_v41 = vpop.f32.mrb[11].mxu1 }
 0x194   :  { %1400 = vtanh.f32 %v753_v40 }
 0x19e   :  { %v1401_v45 = vpop.eup %1400 }
 0x19f   :  { %v755_v47 = vmul.f32 %v1401_v45, %v1399_v44 }
 0x1a1   :  { %v756_v48 = vadd.f32 %v755_v47, %v315_v46 }
 0x1a3   :  { %981 = vst [vmem:[#allocation11] sm:$0xff] %v756_v48 }
 0x1a4   :  { %1529 = shalt.err (!%p1526_p2)
}
 0x1a5   :  { %s1530_s21 = scalar_lea.hbm %s1830_s6, 128 }
 0x1a6   :  { %p1531_p3 = scmp.ne.s32.totalorder %s1830_s6, %s1530_s21  ;;  %p1534_p4 = scmp.lt.u32.totalorder %s1530_s21, %s1830_s6 }
 0x1a8   :  { %p1536_p5 = pnand %p1534_p4, %p1531_p3 }
 0x1aa   :  { %1539 = shalt.err (!%p1536_p5)
}
 0x1ab   :  { %992 = dma.vmem_to_hbm [thread:$0]  %s990_s17, 128, %s1830_s6, [#allocation4]   ;;  %v1083_v51 = vld [vmem:[%s1829_s5 + $0x3] ss:$0 sm:$0xff] }
 0x1ac   :  { %s1582_s6 = smov [#allocation12]  }
 0x1ad   :  { %s999_s9 = sshll.u32 %s1582_s6, 4  ;;  %s1000_s9 = int_to_ptr.vmem [resolvable:$true] %s999_s9 }
 0x1ae   :  { %s1540_s5 = scalar_lea.vmem %s1000_s9, 128  ;;  %p1545_p7 = scmp.lt.s32.totalorder %s1000_s9, %s1000_s9 }
 0x1af   :  { %v872_v49 = vpop.f32.mrb[12].mxu0  ;;  %v960_v50 = vpop.f32.mrb[12].mxu1  ;;  %p1541_p6 = scmp.ne.s32.totalorder %s1000_s9, %s1540_s5  ;;  %p1546_p8 = scmp.lt.s32.totalorder %s1540_s5, %s1540_s5 }
 0x1b0   :  { %v1295_v52 = vpop.f32.mrb[13].mxu0  ;;  %v961_v53 = vadd.f32 %v960_v50, %v872_v49  ;;  %v1315_v54 = vpop.f32.mrb[13].mxu1 }
 0x1b1   :  { %v875_v55 = vpop.f32.mrb[14].mxu0  ;;  %v963_v56 = vpop.f32.mrb[14].mxu1  ;;  %p1547_p9 = por %p1546_p8, %p1545_p7 }
 0x1b2   :  { %v1296_v57 = vpop.f32.mrb[15].mxu0  ;;  %v973_v58 = vadd.f32 %v1083_v51, %v961_v53  ;;  %v1316_v59 = vpop.f32.mrb[15].mxu1 }
 0x1b3   :  { %p1548_p10 = pnand %p1547_p9, %p1541_p6 }
 0x1b4   :  { %v1084_v60 = vmul.f32 -1.442695, %v973_v58 }
 0x1b6   :  { %1402 = vpow2.f32 %v1084_v60 }
 0x1b7   :  { %1404 = vtanh.f32 %v756_v48 }
 0x1c0   :  { %v1403_v61 = vpop.eup %1402 }
 0x1c1   :  { %v977_v62 = vadd.f32 1.0, %v1403_v61  ;;  %v1405_v63 = vpop.eup %1404 }
 0x1c3   :  { %1406 = vrcp.f32 %v977_v62 }
 0x1cd   :  { %v1407_v1 = vpop.eup %1406 }
 0x1ce   :  { %v980_v2 = vmul.f32 %v1407_v1, %v1405_v63 }
 0x1d0   :  { %982 = vst [vmem:[#allocation12] sm:$0xff] %v980_v2 }
 0x1d1   :  { %1551 = shalt.err (!%p1548_p10)
}
 0x1d2   :  { %s1552_s12 = scalar_lea.hbm %s1831_s7, 128 }
 0x1d3   :  { %p1553_p11 = scmp.ne.s32.totalorder %s1831_s7, %s1552_s12  ;;  %p1556_p12 = scmp.lt.u32.totalorder %s1552_s12, %s1831_s7 }
 0x1d5   :  { %p1558_p13 = pnand %p1556_p12, %p1553_p11 }
 0x1d7   :  { %1561 = shalt.err (!%p1558_p13)
}
 0x1d8   :  { %1002 = dma.vmem_to_hbm [thread:$0]  %s1000_s9, 128, %s1831_s7, [#allocation13]  }
 0x1d9   :  { %1568 = dma.done.wait [#allocation4], 128  }
 0x1da   :  { %1569 = vsyncadd [#allocation4], 4294967168 }
 0x1db   :  { %1570 = dma.done.wait [#allocation13], 128  }
 0x1dc   :  { %1571 = vsyncadd [#allocation13], 4294967168 }
 0x1dd   :  { %1009 = vsyncpa [#allocation3], 1 }
 0x1de   :  { %1010 = vsyncpa [#allocation6], 1 }
 0x1df   :  { %1011 = vsyncpa [#allocation9], 1 }
 0x1e0   :  { %1012 = vsyncpa [#allocation4], 1 }
 0x1e1   :  { %1013 = vsyncpa [#allocation13], 1 }

// kernel: tpu_custom_call.1
= control target key start
LH: loop header
LB: loop body
LE: loop exit
PB: predicated region body
PF: predicated region fallthrough
CT: control target
= control target key end

     0   :  { %13 = vsyncpa [#allocation3], 0  ;;  %s1824_s0 = inlined_call_operand.hbm [shape: bf16[8,128], index: 0, kind: input, shape index: {}]   ;;  %s1825_s1 = inlined_call_operand.hbm [shape: bf16[8,128], index: 1, kind: input, shape index: {}]   ;;  %s1826_s2 = inlined_call_operand.hbm [shape: f32[8,128], index: 2, kind: input, shape index: {}]   ;;  %s1827_s3 = inlined_call_operand.hbm [shape: bf16[128,512], index: 3, kind: input, shape index: {}]   ;;  %s1828_s4 = inlined_call_operand.hbm [shape: bf16[128,512], index: 4, kind: input, shape index: {}]   ;;  %s1829_s5 = inlined_call_operand.vmem [shape: f32[1,512], index: 5, kind: input, shape index: {}]   ;;  %s1830_s6 = inlined_call_operand.hbm [shape: f32[8,128], index: 6, kind: output, shape index: {0}]   ;;  %s1831_s7 = inlined_call_operand.hbm [shape: f32[8,128], index: 7, kind: output, shape index: {1}]  }
   0x1   :  { %14 = vsyncpa [#allocation6], 0 }
   0x2   :  { %15 = vsyncpa [#allocation9], 0 }
   0x3   :  { %16 = vsyncpa [#allocation4], 0 }
   0x4   :  { %17 = vsyncpa [#allocation13], 0  ;;  %s1572_s24 = smov [#allocation5]   ;;  %s1573_s26 = smov [#allocation8]  }
   0x5   :  { %s34_s25 = sshll.u32 %s1572_s24, 4  ;;  %s53_s27 = sshll.u32 %s1573_s26, 4  ;;  %s35_s25 = int_to_ptr.vmem [resolvable:$true] %s34_s25  ;;  %s1623_s27 = int_to_ptr.vmem [resolvable:$true] %s53_s27 }
   0x6   :  { %s1408_s30 = scalar_lea.hbm %s1825_s1, 64 }
   0x7   :  { %p1409_p0 = scmp.ne.s32.totalorder %s1825_s1, %s1408_s30  ;;  %p1412_p1 = scmp.lt.u32.totalorder %s1408_s30, %s1825_s1 }
   0x9   :  { %p1414_p2 = pnand %p1412_p1, %p1409_p0 }
   0xb   :  { %1417 = shalt.err (!%p1414_p2)
}
   0xc   :  { %s1418_s12 = scalar_lea.vmem %s35_s25, 64  ;;  %p1423_p4 = scmp.lt.s32.totalorder %s35_s25, %s35_s25 }
   0xd   :  { %p1419_p3 = scmp.ne.s32.totalorder %s35_s25, %s1418_s12  ;;  %p1424_p5 = scmp.lt.s32.totalorder %s1418_s12, %s1418_s12 }
   0xf   :  { %p1425_p6 = por %p1424_p5, %p1423_p4 }
  0x11   :  { %p1426_p7 = pnand %p1425_p6, %p1419_p3 }
  0x13   :  { %1429 = shalt.err (!%p1426_p7)
}
  0x14   :  { %37 = dma.hbm_to_vmem [thread:$0]  %s1825_s1, 64, %s35_s25, [#allocation6]  }
  0x15   :  { %s1430_s17 = scalar_lea.hbm %s1827_s3, 4096 }
  0x16   :  { %p1431_p8 = scmp.ne.s32.totalorder %s1827_s3, %s1430_s17  ;;  %p1434_p9 = scmp.lt.u32.totalorder %s1430_s17, %s1827_s3 }
  0x18   :  { %p1436_p10 = pnand %p1434_p9, %p1431_p8 }
  0x1a   :  { %1439 = shalt.err (!%p1436_p10)
}
  0x1b   :  { %s1440_s22 = scalar_lea.vmem %s1623_s27, 4096  ;;  %p1445_p12 = scmp.lt.s32.totalorder %s1623_s27, %s1623_s27 }
  0x1c   :  { %p1441_p11 = scmp.ne.s32.totalorder %s1623_s27, %s1440_s22  ;;  %p1446_p13 = scmp.lt.s32.totalorder %s1440_s22, %s1440_s22 }
  0x1e   :  { %p1447_p0 = por %p1446_p13, %p1445_p12 }
  0x20   :  { %p1448_p1 = pnand %p1447_p0, %p1441_p11 }
  0x22   :  { %1451 = shalt.err (!%p1448_p1)
}
  0x23   :  { %s1574_s1 = smov 256   ;;  %s1575_s23 = smov 16  }
  0x24   :  { %59 = dma.hbm_to_vmem [thread:$0]  %s1827_s3, 4096, %s1623_s27, [#allocation9], %s1574_s1, %s1574_s1, %s1575_s23  }
  0x25   :  { %s1576_s26 = smov [#allocation2]   ;;  %s1577_s29 = smov [#allocation7]  }
  0x26   :  { %s24_s28 = sshll.u32 %s1576_s26, 4  ;;  %s44_s30 = sshll.u32 %s1577_s29, 4  ;;  %s25_s28 = int_to_ptr.vmem [resolvable:$true] %s24_s28  ;;  %s45_s30 = int_to_ptr.vmem [resolvable:$true] %s44_s30 }
  0x27   :  { %s1452_s10 = scalar_lea.hbm %s1824_s0, 64 }
  0x28   :  { %p1453_p2 = scmp.ne.s32.totalorder %s1824_s0, %s1452_s10  ;;  %p1456_p3 = scmp.lt.u32.totalorder %s1452_s10, %s1824_s0 }
  0x2a   :  { %p1458_p4 = pnand %p1456_p3, %p1453_p2 }
  0x2c   :  { %1461 = shalt.err (!%p1458_p4)
}
  0x2d   :  { %s1462_s3 = scalar_lea.vmem %s25_s28, 64  ;;  %p1467_p6 = scmp.lt.s32.totalorder %s25_s28, %s25_s28 }
  0x2e   :  { %p1463_p5 = scmp.ne.s32.totalorder %s25_s28, %s1462_s3  ;;  %p1468_p7 = scmp.lt.s32.totalorder %s1462_s3, %s1462_s3 }
  0x30   :  { %p1469_p8 = por %p1468_p7, %p1467_p6 }
  0x32   :  { %p1470_p9 = pnand %p1469_p8, %p1463_p5 }
  0x34   :  { %1473 = shalt.err (!%p1470_p9)
}
  0x35   :  { %27 = dma.hbm_to_vmem [thread:$0]  %s1824_s0, 64, %s25_s28, [#allocation3]  }
  0x36   :  { %s1474_s18 = scalar_lea.hbm %s1826_s2, 128 }
  0x37   :  { %p1475_p10 = scmp.ne.s32.totalorder %s1826_s2, %s1474_s18  ;;  %p1478_p11 = scmp.lt.u32.totalorder %s1474_s18, %s1826_s2 }
  0x39   :  { %p1480_p12 = pnand %p1478_p11, %p1475_p10 }
  0x3b   :  { %1483 = shalt.err (!%p1480_p12)
}
  0x3c   :  { %s1484_s24 = scalar_lea.vmem %s45_s30, 128  ;;  %p1489_p0 = scmp.lt.s32.totalorder %s45_s30, %s45_s30 }
  0x3d   :  { %p1485_p13 = scmp.ne.s32.totalorder %s45_s30, %s1484_s24  ;;  %p1490_p1 = scmp.lt.s32.totalorder %s1484_s24, %s1484_s24 }
  0x3f   :  { %p1491_p2 = por %p1490_p1, %p1489_p0 }
  0x41   :  { %p1492_p3 = pnand %p1491_p2, %p1485_p13 }
  0x43   :  { %1495 = shalt.err (!%p1492_p3)
}
  0x44   :  { %47 = dma.hbm_to_vmem [thread:$0]  %s1826_s2, 128, %s45_s30, [#allocation6]  }
  0x45   :  { %s1578_s26 = smov [#allocation10]   ;;  %s1496_s9 = scalar_lea.hbm %s1828_s4, 4096 }
  0x46   :  { %s65_s28 = sshll.u32 %s1578_s26, 4  ;;  %p1497_p4 = scmp.ne.s32.totalorder %s1828_s4, %s1496_s9  ;;  %s66_s28 = int_to_ptr.vmem [resolvable:$true] %s65_s28 }
  0x47   :  { %p1500_p5 = scmp.lt.u32.totalorder %s1496_s9, %s1828_s4 }
  0x49   :  { %p1502_p6 = pnand %p1500_p5, %p1497_p4 }
  0x4b   :  { %1505 = shalt.err (!%p1502_p6)
}
  0x4c   :  { %s1506_s14 = scalar_lea.vmem %s66_s28, 4096  ;;  %p1511_p8 = scmp.lt.s32.totalorder %s66_s28, %s66_s28 }
  0x4d   :  { %p1507_p7 = scmp.ne.s32.totalorder %s66_s28, %s1506_s14  ;;  %p1512_p9 = scmp.lt.s32.totalorder %s1506_s14, %s1506_s14 }
  0x4f   :  { %p1513_p10 = por %p1512_p9, %p1511_p8 }
  0x51   :  { %p1514_p11 = pnand %p1513_p10, %p1507_p7 }
  0x53   :  { %1517 = shalt.err (!%p1514_p11)
}
  0x54   :  { %71 = dma.hbm_to_vmem [thread:$0]  %s1828_s4, 4096, %s66_s28, [#allocation9], %s1574_s1, %s1574_s1, %s1575_s23  }
  0x55   :  { %1562 = dma.done.wait [#allocation3], 64  }
  0x56   :  { %1563 = vsyncadd [#allocation3], 4294967232 }
  0x57   :  { %1564 = dma.done.wait [#allocation6], 192  }
  0x58   :  { %1565 = vsyncadd [#allocation6], 4294967104 }
  0x59   :  { %1566 = dma.done.wait [#allocation9], 8192  }
  0x5a   :  { %1567 = vsyncadd [#allocation9], 4294959104  ;;  %v1579_v0 = vmov 0.0   ;;  %vm1580_vm0 = vmmov 0   ;;  %v1328_v1 = vld [vmem:[#allocation10] ss:$16 sps:$4 sm:$0xff]  }
  0x5b   :  { %1157 = vmatprep.subr.bf16.mxu0 %v1579_v0  ;;  %1177 = vmatprep.subr.bf16.mxu1 %v1579_v0  ;;  %v1329_v2 = vld [vmem:[#allocation8] ss:$16 sps:$4 sm:$0xff]   ;;  %v1716_v17 = vld [vmem:[#allocation5] sm:$0xf]  ;;  %v1360_v35 = vld [vmem:[#allocation10 + $0x8] ss:$16 sps:$4 sm:$0xff]  }
  0x5c   :  { %1173 = vmatprep.mubr.msk.bf16.mxu0 %vm1580_vm0, %v1579_v0  ;;  %1193 = vmatprep.mubr.msk.bf16.mxu1 %vm1580_vm0, %v1579_v0  ;;  %v1330_v3 = vld [vmem:[#allocation10 + $0x20] ss:$16 sps:$4 sm:$0xff]   ;;  %v1344_v19 = vld [vmem:[#allocation10 + $0x4] ss:$16 sps:$4 sm:$0xff]   ;;  %v1361_v36 = vld [vmem:[#allocation8 + $0x8] ss:$16 sps:$4 sm:$0xff]  }
  0x5d   :  { %1158 = vmatpush3.bf16.msra.mxu0 %v1328_v1  ;;  %1178 = vmatpush3.bf16.msra.mxu1 %v1329_v2  ;;  %v1331_v4 = vld [vmem:[#allocation8 + $0x20] ss:$16 sps:$4 sm:$0xff]   ;;  %v1345_v20 = vld [vmem:[#allocation8 + $0x4] ss:$16 sps:$4 sm:$0xff]   ;;  %v1362_v37 = vld [vmem:[#allocation10 + $0x28] ss:$16 sps:$4 sm:$0xff]  }
  0x5e   :  { %1159 = vmatprep.subr.bf16.mxu0 %v1579_v0  ;;  %1179 = vmatprep.subr.bf16.mxu1 %v1579_v0  ;;  %v1332_v5 = vld [vmem:[#allocation10 + $0x40] ss:$16 sps:$4 sm:$0xff]   ;;  %v1346_v21 = vld [vmem:[#allocation10 + $0x24] ss:$16 sps:$4 sm:$0xff]   ;;  %v1363_v38 = vld [vmem:[#allocation8 + $0x28] ss:$16 sps:$4 sm:$0xff]  }
  0x5f   :  { %v1333_v6 = vld [vmem:[#allocation8 + $0x40] ss:$16 sps:$4 sm:$0xff]   ;;  %v1347_v22 = vld [vmem:[#allocation8 + $0x24] ss:$16 sps:$4 sm:$0xff]   ;;  %v1364_v39 = vld [vmem:[#allocation10 + $0x48] ss:$16 sps:$4 sm:$0xff]  }
  0x60   :  { %v1334_v7 = vld [vmem:[#allocation10 + $0x60] ss:$16 sps:$4 sm:$0xff]   ;;  %v1348_v23 = vld [vmem:[#allocation10 + $0x44] ss:$16 sps:$4 sm:$0xff]   ;;  %v1365_v40 = vld [vmem:[#allocation8 + $0x48] ss:$16 sps:$4 sm:$0xff]  }
  0x61   :  { %1160 = vmatpush3.bf16.msra.mxu0 %v1330_v3  ;;  %1180 = vmatpush3.bf16.msra.mxu1 %v1331_v4  ;;  %v1335_v8 = vld [vmem:[#allocation8 + $0x60] ss:$16 sps:$4 sm:$0xff]   ;;  %v1349_v24 = vld [vmem:[#allocation8 + $0x44] ss:$16 sps:$4 sm:$0xff]   ;;  %v1366_v41 = vld [vmem:[#allocation10 + $0x68] ss:$16 sps:$4 sm:$0xff]  }
  0x62   :  { %1161 = vmatprep.subr.bf16.mxu0 %v1579_v0  ;;  %1181 = vmatprep.subr.bf16.mxu1 %v1579_v0  ;;  %v1336_v9 = vld [vmem:[#allocation10 + $0x80] ss:$16 sps:$4 sm:$0xff]   ;;  %v1350_v25 = vld [vmem:[#allocation10 + $0x64] ss:$16 sps:$4 sm:$0xff]   ;;  %v1367_v42 = vld [vmem:[#allocation8 + $0x68] ss:$16 sps:$4 sm:$0xff]  }
  0x63   :  { %v1337_v10 = vld [vmem:[#allocation8 + $0x80] ss:$16 sps:$4 sm:$0xff]   ;;  %v1351_v26 = vld [vmem:[#allocation8 + $0x64] ss:$16 sps:$4 sm:$0xff]   ;;  %v1368_v43 = vld [vmem:[#allocation10 + $0x88] ss:$16 sps:$4 sm:$0xff]  }
  0x64   :  { %v1338_v11 = vld [vmem:[#allocation10 + $0xa0] ss:$16 sps:$4 sm:$0xff]   ;;  %v1352_v27 = vld [vmem:[#allocation10 + $0x84] ss:$16 sps:$4 sm:$0xff]   ;;  %v1369_v44 = vld [vmem:[#allocation8 + $0x88] ss:$16 sps:$4 sm:$0xff]  }
  0x65   :  { %1162 = vmatpush3.bf16.msra.mxu0 %v1332_v5  ;;  %1182 = vmatpush3.bf16.msra.mxu1 %v1333_v6  ;;  %v1339_v12 = vld [vmem:[#allocation8 + $0xa0] ss:$16 sps:$4 sm:$0xff]   ;;  %v1353_v28 = vld [vmem:[#allocation8 + $0x84] ss:$16 sps:$4 sm:$0xff]   ;;  %v1370_v45 = vld [vmem:[#allocation10 + $0xa8] ss:$16 sps:$4 sm:$0xff]  }
  0x66   :  { %1163 = vmatprep.subr.bf16.mxu0 %v1579_v0  ;;  %1183 = vmatprep.subr.bf16.mxu1 %v1579_v0  ;;  %v1340_v13 = vld [vmem:[#allocation10 + $0xc0] ss:$16 sps:$4 sm:$0xff]   ;;  %v1354_v29 = vld [vmem:[#allocation10 + $0xa4] ss:$16 sps:$4 sm:$0xff]   ;;  %v1371_v46 = vld [vmem:[#allocation8 + $0xa8] ss:$16 sps:$4 sm:$0xff]  }
  0x67   :  { %v1341_v14 = vld [vmem:[#allocation8 + $0xc0] ss:$16 sps:$4 sm:$0xff]   ;;  %v1355_v30 = vld [vmem:[#allocation8 + $0xa4] ss:$16 sps:$4 sm:$0xff]   ;;  %v1372_v47 = vld [vmem:[#allocation10 + $0xc8] ss:$16 sps:$4 sm:$0xff]  }
  0x68   :  { %v1342_v15 = vld [vmem:[#allocation10 + $0xe0] ss:$16 sps:$4 sm:$0xff]   ;;  %v1356_v31 = vld [vmem:[#allocation10 + $0xc4] ss:$16 sps:$4 sm:$0xff]   ;;  %v1373_v48 = vld [vmem:[#allocation8 + $0xc8] ss:$16 sps:$4 sm:$0xff]  }
  0x69   :  { %1164 = vmatpush3.bf16.msra.mxu0 %v1334_v7  ;;  %1184 = vmatpush3.bf16.msra.mxu1 %v1335_v8  ;;  %v1343_v16 = vld [vmem:[#allocation8 + $0xe0] ss:$16 sps:$4 sm:$0xff]   ;;  %v1357_v32 = vld [vmem:[#allocation8 + $0xc4] ss:$16 sps:$4 sm:$0xff]   ;;  %v1374_v49 = vld [vmem:[#allocation10 + $0xe8] ss:$16 sps:$4 sm:$0xff]  }
  0x6a   :  { %1165 = vmatprep.subr.bf16.mxu0 %v1579_v0  ;;  %1185 = vmatprep.subr.bf16.mxu1 %v1579_v0  ;;  %v1718_v18 = vld [vmem:[#allocation2] sm:$0xf]  ;;  %v1358_v33 = vld [vmem:[#allocation10 + $0xe4] ss:$16 sps:$4 sm:$0xff]   ;;  %v1375_v50 = vld [vmem:[#allocation8 + $0xe8] ss:$16 sps:$4 sm:$0xff]  }
  0x6b   :  { %v1359_v34 = vld [vmem:[#allocation8 + $0xe4] ss:$16 sps:$4 sm:$0xff]   ;;  %v1376_v51 = vld [vmem:[#allocation10 + $0xc] ss:$16 sps:$4 sm:$0xff]   ;;  %s1581_s16 = smov [#allocation11]  }
  0x6c   :  { %v1377_v52 = vld [vmem:[#allocation8 + $0xc] ss:$16 sps:$4 sm:$0xff]   ;;  %s989_s17 = sshll.u32 %s1581_s16, 4  ;;  %s990_s17 = int_to_ptr.vmem [resolvable:$true] %s989_s17 }
  0x6d   :  { %1166 = vmatpush3.bf16.msra.mxu0 %v1336_v9  ;;  %1186 = vmatpush3.bf16.msra.mxu1 %v1337_v10  ;;  %v1378_v53 = vld [vmem:[#allocation10 + $0x2c] ss:$16 sps:$4 sm:$0xff]   ;;  %s1518_s18 = scalar_lea.vmem %s990_s17, 128  ;;  %p1523_p13 = scmp.lt.s32.totalorder %s990_s17, %s990_s17 }
  0x6e   :  { %1167 = vmatprep.subr.bf16.mxu0 %v1579_v0  ;;  %1187 = vmatprep.subr.bf16.mxu1 %v1579_v0  ;;  %v1379_v54 = vld [vmem:[#allocation8 + $0x2c] ss:$16 sps:$4 sm:$0xff]   ;;  %p1519_p12 = scmp.ne.s32.totalorder %s990_s17, %s1518_s18  ;;  %p1524_p0 = scmp.lt.s32.totalorder %s1518_s18, %s1518_s18 }
  0x6f   :  { %v1380_v55 = vld [vmem:[#allocation10 + $0x4c] ss:$16 sps:$4 sm:$0xff]  }
  0x70   :  { %v1381_v56 = vld [vmem:[#allocation8 + $0x4c] ss:$16 sps:$4 sm:$0xff]   ;;  %p1525_p1 = por %p1524_p0, %p1523_p13 }
  0x71   :  { %1168 = vmatpush3.bf16.msra.mxu0 %v1338_v11  ;;  %1188 = vmatpush3.bf16.msra.mxu1 %v1339_v12  ;;  %v1382_v57 = vld [vmem:[#allocation10 + $0x6c] ss:$16 sps:$4 sm:$0xff]  }
  0x72   :  { %1169 = vmatprep.subr.bf16.mxu0 %v1579_v0  ;;  %1189 = vmatprep.subr.bf16.mxu1 %v1579_v0  ;;  %v1383_v58 = vld [vmem:[#allocation8 + $0x6c] ss:$16 sps:$4 sm:$0xff]   ;;  %p1526_p2 = pnand %p1525_p1, %p1519_p12 }
  0x73   :  { %v1384_v59 = vld [vmem:[#allocation10 + $0x8c] ss:$16 sps:$4 sm:$0xff]  }
  0x74   :  { %v1385_v60 = vld [vmem:[#allocation8 + $0x8c] ss:$16 sps:$4 sm:$0xff]  }
  0x75   :  { %1170 = vmatpush3.bf16.msra.mxu0 %v1340_v13  ;;  %1190 = vmatpush3.bf16.msra.mxu1 %v1341_v14  ;;  %v1386_v61 = vld [vmem:[#allocation10 + $0xac] ss:$16 sps:$4 sm:$0xff]  }
  0x76   :  { %1171 = vmatprep.subr.bf16.mxu0 %v1579_v0  ;;  %1191 = vmatprep.subr.bf16.mxu1 %v1579_v0  ;;  %v1387_v62 = vld [vmem:[#allocation8 + $0xac] ss:$16 sps:$4 sm:$0xff]  }
  0x77   :  { %v1388_v63 = vld [vmem:[#allocation10 + $0xcc] ss:$16 sps:$4 sm:$0xff]  }
  0x78   :  { %v1389_v1 = vld [vmem:[#allocation8 + $0xcc] ss:$16 sps:$4 sm:$0xff]  }
  0x79   :  { %1172 = vmatpush3.bf16.msra.mxu0 %v1342_v15  ;;  %1192 = vmatpush3.bf16.msra.mxu1 %v1343_v16  ;;  %v1390_v2 = vld [vmem:[#allocation10 + $0xec] ss:$16 sps:$4 sm:$0xff]  }
  0x7a   :  { %1197 = vmatprep.subr.bf16.mxu0 %v1579_v0  ;;  %1217 = vmatprep.subr.bf16.mxu1 %v1579_v0  ;;  %v1391_v3 = vld [vmem:[#allocation8 + $0xec] ss:$16 sps:$4 sm:$0xff]  }
  0x7c   :  { %1174 = vmatmul.mubr.bf16.vlgmr.msra.gmra.mrb[0].mxu0 %v1716_v17  ;;  %1194 = vmatmul.mubr.bf16.vlgmr.msra.gmra.mrb[0].mxu1 %v1718_v18 }
  0x7d   :  { %1198 = vmatpush3.bf16.msra.mxu0 %v1344_v19  ;;  %1218 = vmatpush3.bf16.msra.mxu1 %v1345_v20 }
  0x7e   :  { %1199 = vmatprep.subr.bf16.mxu0 %v1579_v0  ;;  %1219 = vmatprep.subr.bf16.mxu1 %v1579_v0 }
  0x7f   :  { %1213 = vmatprep.mubr.msk.bf16.mxu0 %vm1580_vm0, %v1579_v0  ;;  %1233 = vmatprep.mubr.msk.bf16.mxu1 %vm1580_vm0, %v1579_v0 }
  0x81   :  { %1200 = vmatpush3.bf16.msra.mxu0 %v1346_v21  ;;  %1220 = vmatpush3.bf16.msra.mxu1 %v1347_v22  ;;  %v1048_v22 = vld [vmem:[%s1829_s5 + $0x1] ss:$0 sm:$0xff] }
  0x82   :  { %1201 = vmatprep.subr.bf16.mxu0 %v1579_v0  ;;  %1221 = vmatprep.subr.bf16.mxu1 %v1579_v0 }
  0x85   :  { %1202 = vmatpush3.bf16.msra.mxu0 %v1348_v23  ;;  %1222 = vmatpush3.bf16.msra.mxu1 %v1349_v24 }
  0x86   :  { %1203 = vmatprep.subr.bf16.mxu0 %v1579_v0  ;;  %1223 = vmatprep.subr.bf16.mxu1 %v1579_v0 }
  0x89   :  { %1204 = vmatpush3.bf16.msra.mxu0 %v1350_v25  ;;  %1224 = vmatpush3.bf16.msra.mxu1 %v1351_v26 }
  0x8a   :  { %1205 = vmatprep.subr.bf16.mxu0 %v1579_v0  ;;  %1225 = vmatprep.subr.bf16.mxu1 %v1579_v0 }
  0x8d   :  { %1206 = vmatpush3.bf16.msra.mxu0 %v1352_v27  ;;  %1226 = vmatpush3.bf16.msra.mxu1 %v1353_v28 }
  0x8e   :  { %1207 = vmatprep.subr.bf16.mxu0 %v1579_v0  ;;  %1227 = vmatprep.subr.bf16.mxu1 %v1579_v0 }
  0x91   :  { %1208 = vmatpush3.bf16.msra.mxu0 %v1354_v29  ;;  %1228 = vmatpush3.bf16.msra.mxu1 %v1355_v30 }
  0x92   :  { %1209 = vmatprep.subr.bf16.mxu0 %v1579_v0  ;;  %1229 = vmatprep.subr.bf16.mxu1 %v1579_v0 }
  0x95   :  { %1210 = vmatpush3.bf16.msra.mxu0 %v1356_v31  ;;  %1230 = vmatpush3.bf16.msra.mxu1 %v1357_v32 }
  0x96   :  { %1211 = vmatprep.subr.bf16.mxu0 %v1579_v0  ;;  %1231 = vmatprep.subr.bf16.mxu1 %v1579_v0 }
  0x99   :  { %1212 = vmatpush3.bf16.msra.mxu0 %v1358_v33  ;;  %1232 = vmatpush3.bf16.msra.mxu1 %v1359_v34  ;;  %v1066_v33 = vld [vmem:[%s1829_s5 + $0x2] ss:$0 sm:$0xff] }
  0x9a   :  { %1237 = vmatprep.subr.bf16.mxu0 %v1579_v0  ;;  %1257 = vmatprep.subr.bf16.mxu1 %v1579_v0 }
  0x9c   :  { %1214 = vmatmul.mubr.bf16.vlgmr.msra.gmra.mrb[4].mxu0 %v1716_v17  ;;  %1234 = vmatmul.mubr.bf16.vlgmr.msra.gmra.mrb[4].mxu1 %v1718_v18 }
  0x9d   :  { %1238 = vmatpush3.bf16.msra.mxu0 %v1360_v35  ;;  %1258 = vmatpush3.bf16.msra.mxu1 %v1361_v36 }
  0x9e   :  { %1239 = vmatprep.subr.bf16.mxu0 %v1579_v0  ;;  %1259 = vmatprep.subr.bf16.mxu1 %v1579_v0 }
  0x9f   :  { %1253 = vmatprep.mubr.msk.bf16.mxu0 %vm1580_vm0, %v1579_v0  ;;  %1273 = vmatprep.mubr.msk.bf16.mxu1 %vm1580_vm0, %v1579_v0 }
  0xa1   :  { %1240 = vmatpush3.bf16.msra.mxu0 %v1362_v37  ;;  %1260 = vmatpush3.bf16.msra.mxu1 %v1363_v38 }
  0xa2   :  { %1241 = vmatprep.subr.bf16.mxu0 %v1579_v0  ;;  %1261 = vmatprep.subr.bf16.mxu1 %v1579_v0 }
  0xa5   :  { %1242 = vmatpush3.bf16.msra.mxu0 %v1364_v39  ;;  %1262 = vmatpush3.bf16.msra.mxu1 %v1365_v40 }
  0xa6   :  { %1243 = vmatprep.subr.bf16.mxu0 %v1579_v0  ;;  %1263 = vmatprep.subr.bf16.mxu1 %v1579_v0 }
  0xa9   :  { %1244 = vmatpush3.bf16.msra.mxu0 %v1366_v41  ;;  %1264 = vmatpush3.bf16.msra.mxu1 %v1367_v42 }
  0xaa   :  { %1245 = vmatprep.subr.bf16.mxu0 %v1579_v0  ;;  %1265 = vmatprep.subr.bf16.mxu1 %v1579_v0 }
  0xad   :  { %1246 = vmatpush3.bf16.msra.mxu0 %v1368_v43  ;;  %1266 = vmatpush3.bf16.msra.mxu1 %v1369_v44  ;;  %v314_v43 = vld [vmem:[#allocation7] sm:$0xff] }
  0xae   :  { %1247 = vmatprep.subr.bf16.mxu0 %v1579_v0  ;;  %1267 = vmatprep.subr.bf16.mxu1 %v1579_v0 }
  0xb1   :  { %1248 = vmatpush3.bf16.msra.mxu0 %v1370_v45  ;;  %1268 = vmatpush3.bf16.msra.mxu1 %v1371_v46 }
  0xb2   :  { %1249 = vmatprep.subr.bf16.mxu0 %v1579_v0  ;;  %1269 = vmatprep.subr.bf16.mxu1 %v1579_v0 }
  0xb5   :  { %1250 = vmatpush3.bf16.msra.mxu0 %v1372_v47  ;;  %1270 = vmatpush3.bf16.msra.mxu1 %v1373_v48 }
  0xb6   :  { %1251 = vmatprep.subr.bf16.mxu0 %v1579_v0  ;;  %1271 = vmatprep.subr.bf16.mxu1 %v1579_v0 }
  0xb9   :  { %1252 = vmatpush3.bf16.msra.mxu0 %v1374_v49  ;;  %1272 = vmatpush3.bf16.msra.mxu1 %v1375_v50 }
  0xba   :  { %1277 = vmatprep.subr.bf16.mxu0 %v1579_v0  ;;  %1297 = vmatprep.subr.bf16.mxu1 %v1579_v0 }
  0xbc   :  { %1254 = vmatmul.mubr.bf16.vlgmr.msra.gmra.mrb[8].mxu0 %v1716_v17  ;;  %1274 = vmatmul.mubr.bf16.vlgmr.msra.gmra.mrb[8].mxu1 %v1718_v18 }
  0xbd   :  { %1278 = vmatpush3.bf16.msra.mxu0 %v1376_v51  ;;  %1298 = vmatpush3.bf16.msra.mxu1 %v1377_v52 }
  0xbe   :  { %1279 = vmatprep.subr.bf16.mxu0 %v1579_v0  ;;  %1299 = vmatprep.subr.bf16.mxu1 %v1579_v0 }
  0xbf   :  { %1293 = vmatprep.mubr.msk.bf16.mxu0 %vm1580_vm0, %v1579_v0  ;;  %1313 = vmatprep.mubr.msk.bf16.mxu1 %vm1580_vm0, %v1579_v0 }
  0xc1   :  { %1280 = vmatpush3.bf16.msra.mxu0 %v1378_v53  ;;  %1300 = vmatpush3.bf16.msra.mxu1 %v1379_v54 }
  0xc2   :  { %1281 = vmatprep.subr.bf16.mxu0 %v1579_v0  ;;  %1301 = vmatprep.subr.bf16.mxu1 %v1579_v0 }
  0xc5   :  { %1282 = vmatpush3.bf16.msra.mxu0 %v1380_v55  ;;  %1302 = vmatpush3.bf16.msra.mxu1 %v1381_v56 }
  0xc6   :  { %1283 = vmatprep.subr.bf16.mxu0 %v1579_v0  ;;  %1303 = vmatprep.subr.bf16.mxu1 %v1579_v0 }
  0xc9   :  { %1284 = vmatpush3.bf16.msra.mxu0 %v1382_v57  ;;  %1304 = vmatpush3.bf16.msra.mxu1 %v1383_v58 }
  0xca   :  { %1285 = vmatprep.subr.bf16.mxu0 %v1579_v0  ;;  %1305 = vmatprep.subr.bf16.mxu1 %v1579_v0 }
  0xcd   :  { %1286 = vmatpush3.bf16.msra.mxu0 %v1384_v59  ;;  %1306 = vmatpush3.bf16.msra.mxu1 %v1385_v60 }
  0xce   :  { %1287 = vmatprep.subr.bf16.mxu0 %v1579_v0  ;;  %1307 = vmatprep.subr.bf16.mxu1 %v1579_v0 }
  0xd1   :  { %1288 = vmatpush3.bf16.msra.mxu0 %v1386_v61  ;;  %1308 = vmatpush3.bf16.msra.mxu1 %v1387_v62 }
  0xd2   :  { %1289 = vmatprep.subr.bf16.mxu0 %v1579_v0  ;;  %1309 = vmatprep.subr.bf16.mxu1 %v1579_v0 }
  0xd5   :  { %1290 = vmatpush3.bf16.msra.mxu0 %v1388_v63  ;;  %1310 = vmatpush3.bf16.msra.mxu1 %v1389_v1 }
  0xd6   :  { %1291 = vmatprep.subr.bf16.mxu0 %v1579_v0  ;;  %1311 = vmatprep.subr.bf16.mxu1 %v1579_v0 }
  0xd9   :  { %1292 = vmatpush3.bf16.msra.mxu0 %v1390_v2  ;;  %1312 = vmatpush3.bf16.msra.mxu1 %v1391_v3 }
  0xdc   :  { %1294 = vmatmul.mubr.bf16.vlgmr.msra.gmra.mrb[12].mxu0 %v1716_v17  ;;  %1314 = vmatmul.mubr.bf16.vlgmr.msra.gmra.mrb[12].mxu1 %v1718_v18  ;;  %v1030_v18 = vld [vmem:[%s1829_s5] ss:$0 sm:$0xff] }
 0x14f   :  { %v206_v4 = vpop.f32.mrb[0].mxu0  ;;  %v294_v5 = vpop.f32.mrb[0].mxu1 }
 0x150   :  { %v1175_v6 = vpop.f32.mrb[1].mxu0  ;;  %v295_v7 = vadd.f32 %v294_v5, %v206_v4  ;;  %v1195_v8 = vpop.f32.mrb[1].mxu1 }
 0x151   :  { %v209_v9 = vpop.f32.mrb[2].mxu0  ;;  %v297_v10 = vpop.f32.mrb[2].mxu1 }
 0x152   :  { %v1176_v11 = vpop.f32.mrb[3].mxu0  ;;  %v1196_v12 = vpop.f32.mrb[3].mxu1  ;;  %v307_v23 = vadd.f32 %v1030_v18, %v295_v7 }
 0x154   :  { %v1031_v25 = vmul.f32 -1.442695, %v307_v23 }
 0x156   :  { %1392 = vpow2.f32 %v1031_v25 }
 0x160   :  { %v1393_v27 = vpop.eup %1392 }
 0x161   :  { %v311_v29 = vadd.f32 1.0, %v1393_v27 }
 0x16f   :  { %v430_v13 = vpop.f32.mrb[4].mxu0  ;;  %v518_v14 = vpop.f32.mrb[4].mxu1 }
 0x170   :  { %v1215_v15 = vpop.f32.mrb[5].mxu0  ;;  %v519_v16 = vadd.f32 %v518_v14, %v430_v13  ;;  %v1235_v0 = vpop.f32.mrb[5].mxu1 }
 0x171   :  { %v433_v19 = vpop.f32.mrb[6].mxu0  ;;  %v521_v20 = vpop.f32.mrb[6].mxu1 }
 0x172   :  { %v1216_v21 = vpop.f32.mrb[7].mxu0  ;;  %v1236_v17 = vpop.f32.mrb[7].mxu1  ;;  %v531_v24 = vadd.f32 %v1048_v22, %v519_v16 }
 0x174   :  { %v1049_v26 = vmul.f32 -1.442695, %v531_v24 }
 0x176   :  { %1394 = vpow2.f32 %v1049_v26 }
 0x177   :  { %1396 = vrcp.f32 %v311_v29 }
 0x180   :  { %v1395_v28 = vpop.eup %1394 }
 0x181   :  { %v535_v31 = vadd.f32 1.0, %v1395_v28  ;;  %v1397_v42 = vpop.eup %1396 }
 0x182   :  { %v315_v46 = vmul.f32 %v1397_v42, %v314_v43 }
 0x183   :  { %1398 = vrcp.f32 %v535_v31 }
 0x18d   :  { %v1399_v44 = vpop.eup %1398 }
 0x18f   :  { %v652_v30 = vpop.f32.mrb[8].mxu0  ;;  %v740_v32 = vpop.f32.mrb[8].mxu1 }
 0x190   :  { %v1255_v34 = vpop.f32.mrb[9].mxu0  ;;  %v741_v35 = vadd.f32 %v740_v32, %v652_v30  ;;  %v1275_v36 = vpop.f32.mrb[9].mxu1 }
 0x191   :  { %v655_v37 = vpop.f32.mrb[10].mxu0  ;;  %v743_v38 = vpop.f32.mrb[10].mxu1 }
 0x192   :  { %v1256_v39 = vpop.f32.mrb[11].mxu0  ;;  %v753_v40 = vadd.f32 %v1066_v33, %v741_v35  ;;  %v1276_v41 = vpop.f32.mrb[11].mxu1 }
 0x194   :  { %1400 = vtanh.f32 %v753_v40 }
 0x19e   :  { %v1401_v45 = vpop.eup %1400 }
 0x19f   :  { %v755_v47 = vmul.f32 %v1401_v45, %v1399_v44 }
 0x1a1   :  { %v756_v48 = vadd.f32 %v755_v47, %v315_v46 }
 0x1a3   :  { %981 = vst [vmem:[#allocation11] sm:$0xff] %v756_v48 }
 0x1a4   :  { %1529 = shalt.err (!%p1526_p2)
}
 0x1a5   :  { %s1530_s21 = scalar_lea.hbm %s1830_s6, 128 }
 0x1a6   :  { %p1531_p3 = scmp.ne.s32.totalorder %s1830_s6, %s1530_s21  ;;  %p1534_p4 = scmp.lt.u32.totalorder %s1530_s21, %s1830_s6 }
 0x1a8   :  { %p1536_p5 = pnand %p1534_p4, %p1531_p3 }
 0x1aa   :  { %1539 = shalt.err (!%p1536_p5)
}
 0x1ab   :  { %992 = dma.vmem_to_hbm [thread:$0]  %s990_s17, 128, %s1830_s6, [#allocation4]   ;;  %v1083_v51 = vld [vmem:[%s1829_s5 + $0x3] ss:$0 sm:$0xff] }
 0x1ac   :  { %s1582_s6 = smov [#allocation12]  }
 0x1ad   :  { %s999_s9 = sshll.u32 %s1582_s6, 4  ;;  %s1000_s9 = int_to_ptr.vmem [resolvable:$true] %s999_s9 }
 0x1ae   :  { %s1540_s5 = scalar_lea.vmem %s1000_s9, 128  ;;  %p1545_p7 = scmp.lt.s32.totalorder %s1000_s9, %s1000_s9 }
 0x1af   :  { %v872_v49 = vpop.f32.mrb[12].mxu0  ;;  %v960_v50 = vpop.f32.mrb[12].mxu1  ;;  %p1541_p6 = scmp.ne.s32.totalorder %s1000_s9, %s1540_s5  ;;  %p1546_p8 = scmp.lt.s32.totalorder %s1540_s5, %s1540_s5 }
 0x1b0   :  { %v1295_v52 = vpop.f32.mrb[13].mxu0  ;;  %v961_v53 = vadd.f32 %v960_v50, %v872_v49  ;;  %v1315_v54 = vpop.f32.mrb[13].mxu1 }
 0x1b1   :  { %v875_v55 = vpop.f32.mrb[14].mxu0  ;;  %v963_v56 = vpop.f32.mrb[14].mxu1  ;;  %p1547_p9 = por %p1546_p8, %p1545_p7 }
 0x1b2   :  { %v1296_v57 = vpop.f32.mrb[15].mxu0  ;;  %v973_v58 = vadd.f32 %v1083_v51, %v961_v53  ;;  %v1316_v59 = vpop.f32.mrb[15].mxu1 }
 0x1b3   :  { %p1548_p10 = pnand %p1547_p9, %p1541_p6 }
 0x1b4   :  { %v1084_v60 = vmul.f32 -1.442695, %v973_v58 }
 0x1b6   :  { %1402 = vpow2.f32 %v1084_v60 }
 0x1b7   :  { %1404 = vtanh.f32 %v756_v48 }
 0x1c0   :  { %v1403_v61 = vpop.eup %1402 }
 0x1c1   :  { %v977_v62 = vadd.f32 1.0, %v1403_v61  ;;  %v1405_v63 = vpop.eup %1404 }
 0x1c3   :  { %1406 = vrcp.f32 %v977_v62 }
 0x1cd   :  { %v1407_v1 = vpop.eup %1406 }
 0x1ce   :  { %v980_v2 = vmul.f32 %v1407_v1, %v1405_v63 }
 0x1d0   :  { %982 = vst [vmem:[#allocation12] sm:$0xff] %v980_v2 }
 0x1d1   :  { %1551 = shalt.err (!%p1548_p10)
}
 0x1d2   :  { %s1552_s12 = scalar_lea.hbm %s1831_s7, 128 }
 0x1d3   :  { %p1553_p11 = scmp.ne.s32.totalorder %s1831_s7, %s1552_s12  ;;  %p1556_p12 = scmp.lt.u32.totalorder %s1552_s12, %s1831_s7 }
 0x1d5   :  { %p1558_p13 = pnand %p1556_p12, %p1553_p11 }
 0x1d7   :  { %1561 = shalt.err (!%p1558_p13)
}
 0x1d8   :  { %1002 = dma.vmem_to_hbm [thread:$0]  %s1000_s9, 128, %s1831_s7, [#allocation13]  }
 0x1d9   :  { %1568 = dma.done.wait [#allocation4], 128  }
 0x1da   :  { %1569 = vsyncadd [#allocation4], 4294967168 }
 0x1db   :  { %1570 = dma.done.wait [#allocation13], 128  }
 0x1dc   :  { %1571 = vsyncadd [#allocation13], 4294967168 }
 0x1dd   :  { %1009 = vsyncpa [#allocation3], 1 }
 0x1de   :  { %1010 = vsyncpa [#allocation6], 1 }
 0x1df   :  { %1011 = vsyncpa [#allocation9], 1 }
 0x1e0   :  { %1012 = vsyncpa [#allocation4], 1 }
 0x1e1   :  { %1013 = vsyncpa [#allocation13], 1 }

</bundles_post_ra>
